<compile_context>
chip_gen: v6e
topology: v6e:2x2x1
jax: 0.10.0
libtpu: 0.0.40
codegen_flags: <defaults>
</compile_context>

<pallas_src>
import numpy as np
import jax
import jax.numpy as jnp
from jax.experimental import pallas as pl
from jax.experimental.pallas import tpu as pltpu

LN_EPS = 1e-12


# --------------------------------------------------------------------------- #
# Kernel bodies
# --------------------------------------------------------------------------- #
def _branches_and_layernorm(tok, keep, pf, pb, gamma, beta, out_ref):
    """Three embedding branches + LayerNorm with shared token statistics.

    tok   : (TB, S, D) f32  token embeddings
    keep  : (TB, 1, 1) f32  1 keep / 0 zero-out for the "mask" branch ({0,1})
    pf/pb : (S, D)     f32  forward / backward (flipped) position embeddings
    gamma : (1, D)     f32
    beta  : (1, D)     f32
    out_ref: (TB, 3, S, D)
    """
    odt = out_ref.dtype

    # Token statistics, shared by all three branches.
    mean_t = jnp.mean(tok, axis=-1, keepdims=True)                 # (TB,S,1)
    dt = tok - mean_t
    var_t = jnp.mean(dt * dt, axis=-1, keepdims=True)
    inv_t = jax.lax.rsqrt(var_t + LN_EPS)                          # EUP rsqrt

    # Mask branch: for keep in {0,1}, stats(keep*tok) == keep*stats(tok),
    # so it needs no extra cross-lane reductions.
    out_ref[:, 1, :, :] = (gamma * (dt * (keep * inv_t)) + beta).astype(odt)

    # Forward / backward branches: the mean separates (mean(tok)+mean(pos));
    # only the variance needs its own reduce.  Centered pos is per-block work.
    dpf = pf - jnp.mean(pf, axis=-1, keepdims=True)                # (S,D)
    dpb = pb - jnp.mean(pb, axis=-1, keepdims=True)                # (S,D)

    df = dt + dpf[None]
    inv_f = jax.lax.rsqrt(jnp.mean(df * df, axis=-1, keepdims=True) + LN_EPS)
    out_ref[:, 0, :, :] = (gamma * (df * inv_f) + beta).astype(odt)

    db = dt + dpb[None]
    inv_b = jax.lax.rsqrt(jnp.mean(db * db, axis=-1, keepdims=True) + LN_EPS)
    out_ref[:, 2, :, :] = (gamma * (db * inv_b) + beta).astype(odt)


def _fused_kernel(x_ref, keep_ref, tbl_ref, pf_ref, pb_ref, g_ref, b_ref, out_ref):
    """Small-vocab path: VMEM-resident table, one-hot gather on the idle MXU."""
    TB, _, S, D = out_ref.shape
    V = tbl_ref.shape[0]
    TR = TB * S

    ids = x_ref[...]                                               # (TR, 1) int32
    onehot = (ids == jax.lax.broadcasted_iota(jnp.int32, (TR, V), 1)
              ).astype(jnp.float32)                                # (TR, V)
    tok = jnp.dot(onehot, tbl_ref[...],
                  preferred_element_type=jnp.float32,
                  precision=jax.lax.Precision.HIGHEST)             # exact gather
    tok = tok.reshape(TB, S, D)

    _branches_and_layernorm(tok, keep_ref[...], pf_ref[...], pb_ref[...],
                            g_ref[...], b_ref[...], out_ref)


def _pregather_kernel(tok_ref, keep_ref, pf_ref, pb_ref, g_ref, b_ref, out_ref):
    """Large-vocab fallback: token embeddings were gathered wrapper-side."""
    tok = tok_ref[...].astype(jnp.float32)
    _branches_and_layernorm(tok, keep_ref[...], pf_ref[...], pb_ref[...],
                            g_ref[...], b_ref[...], out_ref)


# --------------------------------------------------------------------------- #
# VMEM budgeting / tile picking
# --------------------------------------------------------------------------- #
def _round_up(x, m):
    return -(-x // m) * m


def _vmem_capacity_bytes():
    try:
        cap = int(pltpu.get_tpu_info().vmem_capacity_bytes)
        if cap < (16 << 20):
            raise ValueError(cap)
        return cap
    except Exception:
        return 64 << 20   # v7x per-TensorCore VMEM; safe floor on every generation


def _step_vmem_bytes(TB, S, D, V_pad, out_itemsize, fused):
    """Rough per-grid-step VMEM estimate (pipelined buffers + temporaries)."""
    Dp = _round_up(D, 128)
    out_blk = TB * 3 * S * Dp * out_itemsize
    keep_blk = TB * 8 * 128 * 4                       # (TB,1,1) sublane/lane padded
    resid = (2 * S * Dp + 2 * 8 * Dp) * 4             # pos_fwd, pos_bwd, gamma, beta
    tmp = 4 * TB * S * Dp * 4                         # tok / centered / LN temporaries
    if fused:
        in_blk = _round_up(TB * S, 8) * 128 * 4       # (TR,1) int32 ids, lane padded
        resid += V_pad * Dp * 4                       # resident vocab table
        tmp += TB * S * _round_up(V_pad, 128) * 4     # one-hot compare temporary
    else:
        in_blk = TB * S * Dp * 4                      # pre-gathered tok block (f32)
    # BlockSpec double-buffers every pipelined operand (incl. constant-index ones).
    return 2 * (out_blk + keep_blk + in_blk + resid) + tmp


def _pick_block_batch(B, S, D, V_pad, out_itemsize, fused, budget_bytes,
                      target_out_bytes=2 << 20):
    """Batch rows per grid step.

    TB must divide B; only the ids block's sublane dim (TB*S) must be a
    multiple of 8 (or the block covers the whole batch).  Prefer >= 4 grid
    steps (v7x: 2 TensorCores x >= 2 pipelined steps each), then the smallest
    TB whose output block reaches the ~2 MiB streaming sweet spot, else the
    largest block that fits the VMEM budget.
    """
    cands = sorted(t for t in range(1, B + 1)
                   if B % t == 0 and ((t * S) % 8 == 0 or t == B))
    fitting = [t for t in cands
               if _step_vmem_bytes(t, S, D, V_pad, out_itemsize, fused) <= budget_bytes]
    if not fitting:
        fitting = cands[:1]
    pool = [t for t in fitting if B // t >= 4] or fitting
    big = [t for t in pool if t * 3 * S * D * out_itemsize >= target_out_bytes]
    return min(big) if big else max(pool)


# --------------------------------------------------------------------------- #
# Wrapper
# --------------------------------------------------------------------------- #
def dynamic_embeddings_forward(x_tokens, tok_table, pos_table, gamma, beta, keep_mask,
                               *, out_dtype=jnp.float32, block_batch=None,
                               fuse_gather=None):
    """x_tokens: (B, S) int32; keep_mask: (B,) with values in {0, 1}.

    Returns (B, 3, S, D) in `out_dtype`.  float32 matches the PyTorch module;
    bfloat16 halves the dominant HBM writeback if downstream accepts it.
    """
    B, S = x_tokens.shape
    V, D = tok_table.shape
    assert pos_table.shape[0] >= S, "max_len must be >= seq_len"
    assert pos_table.shape[1] == D

    out_itemsize = jnp.dtype(out_dtype).itemsize
    V_pad = _round_up(V, 8)

    capacity = _vmem_capacity_bytes()
    budget = int(0.70 * capacity)          # headroom for compiler temporaries
    vmem_limit = int(0.85 * capacity)

    if fuse_gather is None:
        # Keep the table resident only if its (double-buffered) footprint is a
        # small fraction of the budget; otherwise gather wrapper-side.
        fuse_gather = 2 * V_pad * _round_up(D, 128) * 4 <= budget // 4

    if block_batch is None:
        block_batch = _pick_block_batch(B, S, D, V_pad, out_itemsize,
                                        fuse_gather, budget)
    TB = block_batch
    assert B % TB == 0 and ((TB * S) % 8 == 0 or TB == B)

    pos_fwd = pos_table[:S]                 # (S, D) VMEM-resident in kernel
    pos_bwd = pos_fwd[::-1]                 # flipped, also resident (KB-scale)
    keep = keep_mask.astype(jnp.float32).reshape(B, 1, 1)
    gamma2 = gamma.reshape(1, D)
    beta2 = beta.reshape(1, D)

    grid = (B // TB,)
    out_shape = jax.ShapeDtypeStruct((B, 3, S, D), out_dtype)
    out_spec = pl.BlockSpec((TB, 3, S, D), lambda b: (b, 0, 0, 0))
    const2d = lambda b: (0, 0)
    compiler_params = pltpu.CompilerParams(
        dimension_semantics=("parallel",),
        vmem_limit_bytes=vmem_limit,
    )

    if fuse_gather:
        tbl = tok_table if V_pad == V else jnp.pad(tok_table, ((0, V_pad - V), (0, 0)))
        x_rows = x_tokens.reshape(B * S, 1).astype(jnp.int32)
        out = pl.pallas_call(
            _fused_kernel,
            out_shape=out_shape,
            grid=grid,
            in_specs=[
                pl.BlockSpec((TB * S, 1), lambda b: (b, 0)),      # token ids
                pl.BlockSpec((TB, 1, 1), lambda b: (b, 0, 0)),    # keep mask
                pl.BlockSpec((V_pad, D), const2d),                # vocab table (resident)
                pl.BlockSpec((S, D), const2d),                    # pos fwd (resident)
                pl.BlockSpec((S, D), const2d),                    # pos bwd (resident)
                pl.BlockSpec((1, D), const2d),                    # gamma
                pl.BlockSpec((1, D), const2d),                    # beta
            ],
            out_specs=out_spec,
            compiler_params=compiler_params,
        )(x_rows, keep, tbl, pos_fwd, pos_bwd, gamma2, beta2)
    else:
        # Large-vocab fallback: wrapper-side gather, kernel fuses branches + LN.
        tok_emb = jnp.take(tok_table, x_tokens, axis=0).astype(jnp.float32)
        out = pl.pallas_call(
            _pregather_kernel,
            out_shape=out_shape,
            grid=grid,
            in_specs=[
                pl.BlockSpec((TB, S, D), lambda b: (b, 0, 0)),    # gathered tok
                pl.BlockSpec((TB, 1, 1), lambda b: (b, 0, 0)),    # keep mask
                pl.BlockSpec((S, D), const2d),                    # pos fwd
                pl.BlockSpec((S, D), const2d),                    # pos bwd
                pl.BlockSpec((1, D), const2d),                    # gamma
                pl.BlockSpec((1, D), const2d),                    # beta
            ],
            out_specs=out_spec,
            compiler_params=compiler_params,
        )(tok_emb, keep, pos_fwd, pos_bwd, gamma2, beta2)

    # TODO(synk): nn.Dropout is stochastic at train time; treated as identity
    # (eval semantics) here.
    return out


# --------------------------------------------------------------------------- #
# Reference + test
# --------------------------------------------------------------------------- #
def _reference(x, tok_table, pos_table, gamma, beta, keep_mask):
    S = x.shape[1]
    tok = jnp.take(tok_table, x, axis=0)
    pf = pos_table[:S]
    pb = pf[::-1]
    e = jnp.stack([tok + pf[None],
                   tok * keep_mask[:, None, None],
                   tok + pb[None]], axis=1)
    u = e.mean(-1, keepdims=True)
    s = ((e - u) ** 2).mean(-1, keepdims=True)
    return gamma * ((e - u) / jnp.sqrt(s + LN_EPS)) + beta


if __name__ == "__main__":
    # cfg: vocab_size=50, dim=128 (=> max_len = dim = 128), dropout identity.
    B, S, D, VOCAB = 16, 16, 128, 50

    key = jax.random.PRNGKey(0)
    k_tok, k_pos, k_x = jax.random.split(key, 3)

    tok_table = jax.random.normal(k_tok, (VOCAB, D), dtype=jnp.float32)
    pos_table = jax.random.normal(k_pos, (D, D), dtype=jnp.float32)   # max_len = dim
    gamma = jnp.ones((D,), dtype=jnp.float32)
    beta = jnp.zeros((D,), dtype=jnp.float32)

    x = jax.random.randint(k_x, (B, S), 0, VOCAB, dtype=jnp.int32)

    # Replicate the np.random.choice branch-masking: zero int(B*0.15) batch rows
    # of the "mask" branch.
    np.random.seed(0)
    masked_idx = np.random.choice(range(B), int(B * 0.15))
    keep_np = np.ones((B,), dtype=np.float32)
    keep_np[masked_idx] = 0.0
    keep_mask = jnp.asarray(keep_np)

    ref = _reference(x, tok_table, pos_table, gamma, beta, keep_mask)

    # 1) float32 output, fused VMEM-resident gather (matches the module dtype).
    out_f32 = jax.block_until_ready(dynamic_embeddings_forward(
        x, tok_table, pos_table, gamma, beta, keep_mask))
    assert out_f32.shape == (B, 3, S, D) and out_f32.dtype == jnp.float32
    assert jnp.allclose(out_f32, ref, atol=1e-5, rtol=1e-5), \
        float(jnp.max(jnp.abs(out_f32 - ref)))

    # 2) float32 output, pre-gathered fallback path (large-vocab code path).
    out_pg = jax.block_until_ready(dynamic_embeddings_forward(
        x, tok_table, pos_table, gamma, beta, keep_mask, fuse_gather=False))
    assert jnp.allclose(out_pg, ref, atol=1e-5, rtol=1e-5), \
        float(jnp.max(jnp.abs(out_pg - ref)))

    # 3) bfloat16 output: halves the dominant HBM writeback (looser tolerance).
    out_bf16 = jax.block_until_ready(dynamic_embeddings_forward(
        x, tok_table, pos_table, gamma, beta, keep_mask, out_dtype=jnp.bfloat16))
    assert out_bf16.dtype == jnp.bfloat16
    assert jnp.allclose(out_bf16.astype(jnp.float32), ref, atol=5e-2, rtol=2e-2), \
        float(jnp.max(jnp.abs(out_bf16.astype(jnp.float32) - ref)))

    print("KERNEL_OK")
</pallas_src>

<mosaic_0001>
module attributes {stable_mosaic.version = 11 : i64} {
  func.func @_fused_kernel(%arg0: i32, %arg1: memref<64x1xi32, #tpu.memory_space<vmem>>, %arg2: memref<4x1x1xf32, #tpu.memory_space<vmem>>, %arg3: memref<56x128xf32, #tpu.memory_space<vmem>>, %arg4: memref<16x128xf32, #tpu.memory_space<vmem>>, %arg5: memref<16x128xf32, #tpu.memory_space<vmem>>, %arg6: memref<1x128xf32, #tpu.memory_space<vmem>>, %arg7: memref<1x128xf32, #tpu.memory_space<vmem>>, %arg8: memref<4x3x16x128xf32, #tpu.memory_space<vmem>>) attributes {dimension_semantics = [#tpu.dimension_semantics<parallel>], iteration_bounds = array<i64: 4>, scalar_prefetch = 0 : i64, scratch_operands = 0 : i64, tpu.core_type = #tpu.core_type<tc>, window_params = [{transform_indices = @transform_0, window_bounds = array<i64: 64, 1>}, {transform_indices = @transform_1, window_bounds = array<i64: 4, 1, 1>}, {pipeline_mode = #tpu.pipeline_mode<synchronous>, transform_indices = @transform_2, window_bounds = array<i64: 56, 128>}, {pipeline_mode = #tpu.pipeline_mode<synchronous>, transform_indices = @transform_3, window_bounds = array<i64: 16, 128>}, {pipeline_mode = #tpu.pipeline_mode<synchronous>, transform_indices = @transform_4, window_bounds = array<i64: 16, 128>}, {pipeline_mode = #tpu.pipeline_mode<synchronous>, transform_indices = @transform_5, window_bounds = array<i64: 1, 128>}, {pipeline_mode = #tpu.pipeline_mode<synchronous>, transform_indices = @transform_6, window_bounds = array<i64: 1, 128>}, {transform_indices = @transform_7, window_bounds = array<i64: 4, 3, 16, 128>}]} {
    %c0 = arith.constant 0 : index
    %c0_0 = arith.constant 0 : index
    %0 = vector.load %arg1[%c0, %c0_0] : memref<64x1xi32, #tpu.memory_space<vmem>>, vector<64x1xi32>
    %1 = tpu.iota {dimensions = array<i32: 1>} : vector<64x56xi32>
    %2 = vector.broadcast %0 : vector<64x1xi32> to vector<64x56xi32>
    %3 = arith.cmpi eq, %2, %1 : vector<64x56xi32>
    %4 = arith.extui %3 : vector<64x56xi1> to vector<64x56xi32>
    %5 = arith.sitofp %4 : vector<64x56xi32> to vector<64x56xf32>
    %c0_1 = arith.constant 0 : index
    %c0_2 = arith.constant 0 : index
    %6 = vector.load %arg3[%c0_1, %c0_2] : memref<56x128xf32, #tpu.memory_space<vmem>>, vector<56x128xf32>
    %cst = arith.constant dense<0.000000e+00> : vector<64x128xf32>
    %7 = tpu.matmul %5, %6, %cst {dimension_numbers = #tpu.dot_dimension_numbers<[1], [0], [0], [1], [0, 0, 1, 1], [], []>, precision = #tpu.contract_precision<fp32>} : vector<64x56xf32>, vector<56x128xf32>, vector<64x128xf32> -> vector<64x128xf32>
    %8 = vector.shape_cast %7 : vector<64x128xf32> to vector<4x16x128xf32>
    %c0_3 = arith.constant 0 : index
    %c0_4 = arith.constant 0 : index
    %c0_5 = arith.constant 0 : index
    %9 = vector.load %arg2[%c0_3, %c0_4, %c0_5] : memref<4x1x1xf32, #tpu.memory_space<vmem>>, vector<4x1x1xf32>
    %c0_6 = arith.constant 0 : index
    %c0_7 = arith.constant 0 : index
    %10 = vector.load %arg4[%c0_6, %c0_7] : memref<16x128xf32, #tpu.memory_space<vmem>>, vector<16x128xf32>
    %c0_8 = arith.constant 0 : index
    %c0_9 = arith.constant 0 : index
    %11 = vector.load %arg5[%c0_8, %c0_9] : memref<16x128xf32, #tpu.memory_space<vmem>>, vector<16x128xf32>
    %c0_10 = arith.constant 0 : index
    %c0_11 = arith.constant 0 : index
    %12 = vector.load %arg6[%c0_10, %c0_11] : memref<1x128xf32, #tpu.memory_space<vmem>>, vector<1x128xf32>
    %c0_12 = arith.constant 0 : index
    %c0_13 = arith.constant 0 : index
    %13 = vector.load %arg7[%c0_12, %c0_13] : memref<1x128xf32, #tpu.memory_space<vmem>>, vector<1x128xf32>
    %cst_14 = arith.constant dense<0.000000e+00> : vector<4x16xf32>
    %14 = vector.multi_reduction <add>, %8, %cst_14 [2] : vector<4x16x128xf32> to vector<4x16xf32>
    %15 = vector.shape_cast %14 : vector<4x16xf32> to vector<4x16x1xf32>
    %cst_15 = arith.constant 1.280000e+02 : f32
    %16 = vector.broadcast %cst_15 : f32 to vector<4x16x1xf32>
    %17 = arith.divf %15, %16 : vector<4x16x1xf32>
    %18 = vector.broadcast %17 : vector<4x16x1xf32> to vector<4x16x128xf32>
    %19 = arith.subf %8, %18 : vector<4x16x128xf32>
    %20 = arith.mulf %19, %19 : vector<4x16x128xf32>
    %cst_16 = arith.constant dense<0.000000e+00> : vector<4x16xf32>
    %21 = vector.multi_reduction <add>, %20, %cst_16 [2] : vector<4x16x128xf32> to vector<4x16xf32>
    %22 = vector.shape_cast %21 : vector<4x16xf32> to vector<4x16x1xf32>
    %cst_17 = arith.constant 1.280000e+02 : f32
    %23 = vector.broadcast %cst_17 : f32 to vector<4x16x1xf32>
    %24 = arith.divf %22, %23 : vector<4x16x1xf32>
    %cst_18 = arith.constant 9.99999996E-13 : f32
    %25 = vector.broadcast %cst_18 : f32 to vector<4x16x1xf32>
    %26 = arith.addf %24, %25 : vector<4x16x1xf32>
    %27 = math.rsqrt %26 : vector<4x16x1xf32>
    %28 = vector.broadcast %9 : vector<4x1x1xf32> to vector<4x16x1xf32>
    %29 = arith.mulf %28, %27 : vector<4x16x1xf32>
    %30 = vector.broadcast %29 : vector<4x16x1xf32> to vector<4x16x128xf32>
    %31 = arith.mulf %19, %30 : vector<4x16x128xf32>
    %32 = vector.shape_cast %12 : vector<1x128xf32> to vector<1x1x128xf32>
    %33 = vector.broadcast %32 : vector<1x1x128xf32> to vector<4x16x128xf32>
    %34 = arith.mulf %33, %31 : vector<4x16x128xf32>
    %35 = vector.shape_cast %13 : vector<1x128xf32> to vector<1x1x128xf32>
    %36 = vector.broadcast %35 : vector<1x1x128xf32> to vector<4x16x128xf32>
    %37 = arith.addf %34, %36 : vector<4x16x128xf32>
    %c0_19 = arith.constant 0 : index
    %c1 = arith.constant 1 : index
    %c0_20 = arith.constant 0 : index
    %c0_21 = arith.constant 0 : index
    %38 = vector.load %arg8[%c0_19, %c1, %c0_20, %c0_21] : memref<4x3x16x128xf32, #tpu.memory_space<vmem>>, vector<4x1x16x128xf32>
    %39 = vector.shape_cast %38 : vector<4x1x16x128xf32> to vector<4x16x128xf32>
    %40 = vector.shape_cast %37 : vector<4x16x128xf32> to vector<4x1x16x128xf32>
    tpu.vector_store %arg8[%c0_19, %c1, %c0_20, %c0_21], %40 {strides = array<i32>} : memref<4x3x16x128xf32, #tpu.memory_space<vmem>>, vector<4x1x16x128xf32>,
    %cst_22 = arith.constant dense<0.000000e+00> : vector<16xf32>
    %41 = vector.multi_reduction <add>, %10, %cst_22 [1] : vector<16x128xf32> to vector<16xf32>
    %42 = vector.shape_cast %41 : vector<16xf32> to vector<16x1xf32>
    %cst_23 = arith.constant 1.280000e+02 : f32
    %43 = vector.broadcast %cst_23 : f32 to vector<16x1xf32>
    %44 = arith.divf %42, %43 : vector<16x1xf32>
    %45 = vector.broadcast %44 : vector<16x1xf32> to vector<16x128xf32>
    %46 = arith.subf %10, %45 : vector<16x128xf32>
    %cst_24 = arith.constant dense<0.000000e+00> : vector<16xf32>
    %47 = vector.multi_reduction <add>, %11, %cst_24 [1] : vector<16x128xf32> to vector<16xf32>
    %48 = vector.shape_cast %47 : vector<16xf32> to vector<16x1xf32>
    %cst_25 = arith.constant 1.280000e+02 : f32
    %49 = vector.broadcast %cst_25 : f32 to vector<16x1xf32>
    %50 = arith.divf %48, %49 : vector<16x1xf32>
    %51 = vector.broadcast %50 : vector<16x1xf32> to vector<16x128xf32>
    %52 = arith.subf %11, %51 : vector<16x128xf32>
    %53 = vector.shape_cast %46 : vector<16x128xf32> to vector<1x16x128xf32>
    %54 = vector.broadcast %53 : vector<1x16x128xf32> to vector<4x16x128xf32>
    %55 = arith.addf %19, %54 : vector<4x16x128xf32>
    %56 = arith.mulf %55, %55 : vector<4x16x128xf32>
    %cst_26 = arith.constant dense<0.000000e+00> : vector<4x16xf32>
    %57 = vector.multi_reduction <add>, %56, %cst_26 [2] : vector<4x16x128xf32> to vector<4x16xf32>
    %58 = vector.shape_cast %57 : vector<4x16xf32> to vector<4x16x1xf32>
    %cst_27 = arith.constant 1.280000e+02 : f32
    %59 = vector.broadcast %cst_27 : f32 to vector<4x16x1xf32>
    %60 = arith.divf %58, %59 : vector<4x16x1xf32>
    %cst_28 = arith.constant 9.99999996E-13 : f32
    %61 = vector.broadcast %cst_28 : f32 to vector<4x16x1xf32>
    %62 = arith.addf %60, %61 : vector<4x16x1xf32>
    %63 = math.rsqrt %62 : vector<4x16x1xf32>
    %64 = vector.broadcast %63 : vector<4x16x1xf32> to vector<4x16x128xf32>
    %65 = arith.mulf %55, %64 : vector<4x16x128xf32>
    %66 = vector.shape_cast %12 : vector<1x128xf32> to vector<1x1x128xf32>
    %67 = vector.broadcast %66 : vector<1x1x128xf32> to vector<4x16x128xf32>
    %68 = arith.mulf %67, %65 : vector<4x16x128xf32>
    %69 = vector.shape_cast %13 : vector<1x128xf32> to vector<1x1x128xf32>
    %70 = vector.broadcast %69 : vector<1x1x128xf32> to vector<4x16x128xf32>
    %71 = arith.addf %68, %70 : vector<4x16x128xf32>
    %c0_29 = arith.constant 0 : index
    %c0_30 = arith.constant 0 : index
    %c0_31 = arith.constant 0 : index
    %c0_32 = arith.constant 0 : index
    %72 = vector.load %arg8[%c0_29, %c0_30, %c0_31, %c0_32] : memref<4x3x16x128xf32, #tpu.memory_space<vmem>>, vector<4x1x16x128xf32>
    %73 = vector.shape_cast %72 : vector<4x1x16x128xf32> to vector<4x16x128xf32>
    %74 = vector.shape_cast %71 : vector<4x16x128xf32> to vector<4x1x16x128xf32>
    tpu.vector_store %arg8[%c0_29, %c0_30, %c0_31, %c0_32], %74 {strides = array<i32>} : memref<4x3x16x128xf32, #tpu.memory_space<vmem>>, vector<4x1x16x128xf32>,
    %75 = vector.shape_cast %52 : vector<16x128xf32> to vector<1x16x128xf32>
    %76 = vector.broadcast %75 : vector<1x16x128xf32> to vector<4x16x128xf32>
    %77 = arith.addf %19, %76 : vector<4x16x128xf32>
    %78 = arith.mulf %77, %77 : vector<4x16x128xf32>
    %cst_33 = arith.constant dense<0.000000e+00> : vector<4x16xf32>
    %79 = vector.multi_reduction <add>, %78, %cst_33 [2] : vector<4x16x128xf32> to vector<4x16xf32>
    %80 = vector.shape_cast %79 : vector<4x16xf32> to vector<4x16x1xf32>
    %cst_34 = arith.constant 1.280000e+02 : f32
    %81 = vector.broadcast %cst_34 : f32 to vector<4x16x1xf32>
    %82 = arith.divf %80, %81 : vector<4x16x1xf32>
    %cst_35 = arith.constant 9.99999996E-13 : f32
    %83 = vector.broadcast %cst_35 : f32 to vector<4x16x1xf32>
    %84 = arith.addf %82, %83 : vector<4x16x1xf32>
    %85 = math.rsqrt %84 : vector<4x16x1xf32>
    %86 = vector.broadcast %85 : vector<4x16x1xf32> to vector<4x16x128xf32>
    %87 = arith.mulf %77, %86 : vector<4x16x128xf32>
    %88 = vector.shape_cast %12 : vector<1x128xf32> to vector<1x1x128xf32>
    %89 = vector.broadcast %88 : vector<1x1x128xf32> to vector<4x16x128xf32>
    %90 = arith.mulf %89, %87 : vector<4x16x128xf32>
    %91 = vector.shape_cast %13 : vector<1x128xf32> to vector<1x1x128xf32>
    %92 = vector.broadcast %91 : vector<1x1x128xf32> to vector<4x16x128xf32>
    %93 = arith.addf %90, %92 : vector<4x16x128xf32>
    %c0_36 = arith.constant 0 : index
    %c2 = arith.constant 2 : index
    %c0_37 = arith.constant 0 : index
    %c0_38 = arith.constant 0 : index
    %94 = vector.load %arg8[%c0_36, %c2, %c0_37, %c0_38] : memref<4x3x16x128xf32, #tpu.memory_space<vmem>>, vector<4x1x16x128xf32>
    %95 = vector.shape_cast %94 : vector<4x1x16x128xf32> to vector<4x16x128xf32>
    %96 = vector.shape_cast %93 : vector<4x16x128xf32> to vector<4x1x16x128xf32>
    tpu.vector_store %arg8[%c0_36, %c2, %c0_37, %c0_38], %96 {strides = array<i32>} : memref<4x3x16x128xf32, #tpu.memory_space<vmem>>, vector<4x1x16x128xf32>,
    return
  }
  func.func @transform_0(%arg0: i32) -> (i32, i32) {
    %c0_i32 = arith.constant 0 : i32
    %c0_i32_0 = arith.constant 0 : i32
    return %arg0, %c0_i32 : i32, i32
  }
  func.func @transform_1(%arg0: i32) -> (i32, i32, i32) {
    %c0_i32 = arith.constant 0 : i32
    %c0_i32_0 = arith.constant 0 : i32
    %c0_i32_1 = arith.constant 0 : i32
    return %arg0, %c0_i32, %c0_i32_0 : i32, i32, i32
  }
  func.func @transform_2(%arg0: i32) -> (i32, i32) {
    %c0_i32 = arith.constant 0 : i32
    %c0_i32_0 = arith.constant 0 : i32
    %c0_i32_1 = arith.constant 0 : i32
    return %c0_i32, %c0_i32_0 : i32, i32
  }
  func.func @transform_3(%arg0: i32) -> (i32, i32) {
    %c0_i32 = arith.constant 0 : i32
    %c0_i32_0 = arith.constant 0 : i32
    %c0_i32_1 = arith.constant 0 : i32
    return %c0_i32, %c0_i32_0 : i32, i32
  }
  func.func @transform_4(%arg0: i32) -> (i32, i32) {
    %c0_i32 = arith.constant 0 : i32
    %c0_i32_0 = arith.constant 0 : i32
    %c0_i32_1 = arith.constant 0 : i32
    return %c0_i32, %c0_i32_0 : i32, i32
  }
  func.func @transform_5(%arg0: i32) -> (i32, i32) {
    %c0_i32 = arith.constant 0 : i32
    %c0_i32_0 = arith.constant 0 : i32
    %c0_i32_1 = arith.constant 0 : i32
    return %c0_i32, %c0_i32_0 : i32, i32
  }
  func.func @transform_6(%arg0: i32) -> (i32, i32) {
    %c0_i32 = arith.constant 0 : i32
    %c0_i32_0 = arith.constant 0 : i32
    %c0_i32_1 = arith.constant 0 : i32
    return %c0_i32, %c0_i32_0 : i32, i32
  }
  func.func @transform_7(%arg0: i32) -> (i32, i32, i32, i32) {
    %c0_i32 = arith.constant 0 : i32
    %c0_i32_0 = arith.constant 0 : i32
    %c0_i32_1 = arith.constant 0 : i32
    %c0_i32_2 = arith.constant 0 : i32
    return %arg0, %c0_i32, %c0_i32_0, %c0_i32_1 : i32, i32, i32, i32
  }
}

</mosaic_0001>

<bundles_post_ra>
// kernel: tpu_custom_call.1
= control target key start
LH: loop header
LB: loop body
LE: loop exit
PB: predicated region body
PF: predicated region fallthrough
CT: control target
= control target key end

     0   :  { %12 = vsyncpa [#allocation3], 0  ;;  %s2870_s0 = inlined_call_operand.vmem [shape: s32[256,1], index: 0, kind: input, shape index: {}]   ;;  %s2871_s1 = inlined_call_operand.vmem [shape: f32[16,1,1], index: 1, kind: input, shape index: {}]   ;;  %s2872_s2 = inlined_call_operand.vmem [shape: f32[56,128], index: 2, kind: input, shape index: {}]   ;;  %s2873_s3 = inlined_call_operand.vmem [shape: f32[16,128], index: 3, kind: input, shape index: {}]   ;;  %s2874_s4 = inlined_call_operand.vmem [shape: f32[16,128], index: 4, kind: input, shape index: {}]   ;;  %s2875_s5 = inlined_call_operand.vmem [shape: f32[1,128], index: 5, kind: input, shape index: {}]   ;;  %s2876_s6 = inlined_call_operand.vmem [shape: f32[1,128], index: 6, kind: input, shape index: {}]   ;;  %s2877_s7 = inlined_call_operand.hbm [shape: f32[16,3,16,128], index: 7, kind: output, shape index: {}]  }
   0x1   :  { %14 = vsyncpa [#allocation3 + $0x1], 0  ;;  %s2215_s24 = smov 0   ;;  %s2217_s25 = smov 0  }
   0x2   :  { %s2219_s26 = smov 0   ;;  %s2221_s27 = smov 0  }
   0x3 LB: > { %s2236_s28 = sadd.s32 4294967295, %s2168_s27   ;;  %s1701_s29 = sadd.s32 4294967294, %s2168_s27   ;;  %s2168_s27 = sphi %s2221_s27, %s2883_s27   ;;  %s2164_s26 = sphi %s2219_s26, %s2882_s26   ;;  %s2160_s25 = sphi %s2217_s25, %s2881_s25   ;;  %s2156_s24 = sphi %s2215_s24, %s2880_s24  }
   0x4   : > { %s2240_s30 = sadd.s32 1, %s2168_s27   ;;  %s184_s8 = sadd.s32 1, %s2164_s26 }
   0x5   : > { %s181_s9 = ssub.s32 %s2168_s27, %s2240_s30  ;;  %p194_p0 = scmp.ne.s32.totalorder %s2164_s26, %s2160_s25 }
   0x6   : > { %p182_p1 = scmp.eq.s32.totalorder %s181_s9, 0  ;;  %p195_p2 = scmp.eq.s32.totalorder %s2236_s28, 3 }
   0x7   : > { %p200_p3 = scmp.ne.s32.totalorder %s2160_s25, %s2156_s24  ;;  %p201_p4 = scmp.eq.s32.totalorder %s1701_s29, 3 }
   0x8   : > { %s2251_s10 = scalar_select %p182_p1, %s2164_s26, %s184_s8  }
   0x9   : > { %p2253_p5 = por %p195_p2, %p194_p0  ;;  %p2257_p6 = por %p201_p4, %p200_p3 }
   0xa   : > { %p1704_p7 = scmp.ge.s32.totalorder %s2168_s27, 1  ;;  %p251_p8 = scmp.lt.s32.totalorder %s2168_s27, 5 }
   0xc   : > { %p252_p9 = pnand %p1704_p7, %p251_p8 }
   0xd   : > { %s1705_s13 = sshll.u32 (!%p252_p9), %s2236_s28, 3  ;;  %s1707_s9 = sshll.u32 (!%p252_p9), %s2236_s28, 2 }
   0xe   : > { %255 = sbr.rel (%p252_p9) target bundleno = 867 (0x363), region = 48  ;;  %p288_p10 = scmp.lt.s32.totalorder (!%p252_p9), %s1705_s13, 31 }
   0xf   : > { %p294_p11 = scmp.lt.s32.totalorder (!%p252_p9), %s1707_s9, 15  ;;  %s284_s17 = sand.u32 (!%p252_p9), 1, %s2160_s25  }
  0x10   : > { %s2013_s19 = smul.u32 (!%p252_p9), 192, %s284_s17  ;;  %s2830_s14 = scalar_lea.sflag (!%p252_p9), [#allocation3], %s284_s17 }
  0x11   : > { %s2014_s23 = smul.u32 (!%p252_p9), 3072, %s2236_s28 }
  0x12   : > { %s2729_s22 = scalar_lea.vmem (!%p252_p9), [#allocation2], %s2013_s19 }
  0x13   : > { %v363_v0 = vld [vmem:[%s2872_s2 + $0x30] sm:$0xff]  ;;  %v362_v1 = vld [vmem:[%s2872_s2 + $0x28] sm:$0xff]  ;;  %v361_v2 = vld [vmem:[%s2872_s2 + $0x20] sm:$0xff]  ;;  %v2170_v3 = vmov 0   ;;  %s2885_s13 = smov (!%p288_p10, %s1705_s13), 31  ;;  %v307_v51 = vlaneseq  ;;  %vm364_vm0 = vcmask 457728   ;;  %s2824_s28 = scalar_lea.hbm %s2877_s7, %s2014_s23 }
  0x14   : > { %2059 = vset.pattern.permute.xlu1 %v2170_v3  ;;  %2058 = vset.pattern.permute.xlu0 %v2170_v3  ;;  %v2273_v4 = vand.u32 4294901760, %v363_v0  ;;  %v2275_v5 = vand.u32 4294901760, %v362_v1  ;;  %v2277_v6 = vand.u32 4294901760, %v361_v2  ;;  %v360_v7 = vld [vmem:[%s2872_s2 + $0x18] sm:$0xff]  ;;  %v359_v9 = vld [vmem:[%s2872_s2 + $0x10] sm:$0xff]  ;;  %v358_v10 = vld [vmem:[%s2872_s2 + $0x8] sm:$0xff] }
  0x15   : > { %v2282_v8 = vand.u32 4294901760, %v360_v7  ;;  %v2300_v14 = vand.u32 4294901760, %v359_v9  ;;  %v357_v15 = vld [vmem:[%s2872_s2] sm:$0xff]  ;;  %v2309_v17 = vand.u32 4294901760, %v358_v10  ;;  %s1706_s15 = sshll.u32 %s2885_s13, 3  ;;  %v308_v52 = vand.u32 127, %v307_v51 }
  0x16   : > { %v2291_v11 = vsub.f32 %v363_v0, %v2273_v4  ;;  %v2294_v12 = vsub.f32 %v362_v1, %v2275_v5  ;;  %v2297_v13 = vsub.f32 %v361_v2, %v2277_v6  ;;  %1857 = vmatprep.subr.mxu0 %v2273_v4  ;;  %s2324_s18 = scalar_lea.vmem %s2870_s0, %s1706_s15  ;;  %v2330_v22 = vand.u32 4294901760, %v357_v15  ;;  %s2887_s9 = smov (!%p294_p11, %s1707_s9), 15 }
  0x17   : > { %v2306_v16 = vsub.f32 %v360_v7, %v2282_v8  ;;  %1858 = vmatpush3.msra.mxu0 %v2273_v4  ;;  %v2327_v21 = vsub.f32 %v359_v9, %v2300_v14  ;;  %v301_v23 = vld [vmem:[%s2324_s18 + $0x10] sm:$0xff]  ;;  %v299_v24 = vld [vmem:[%s2324_s18] sm:$0xff]  ;;  %v2343_v28 = vsub.f32 %v358_v10, %v2309_v17  ;;  %v302_v29 = vld [vmem:[%s2324_s18 + $0x18] sm:$0xff]  ;;  %v2171_v55 = vmov 0.0   ;;  %s2702_s16 = scalar_lea.vmem %s2871_s1, %s2887_s9  ;;  %s1630_s29 = sshll.u32 %s2729_s22, 4  ;;  %s2818_s29 = int_to_ptr.vmem [resolvable:$true] %s1630_s29 }
  0x18   : > { %v2312_v18 = vand.u32 4294901760, %v2291_v11  ;;  %v2315_v19 = vand.u32 4294901760, %v2294_v12  ;;  %v2318_v20 = vand.u32 4294901760, %v2297_v13  ;;  %1859 = vmatprep.subr.mxu0 %v2275_v5  ;;  %316 = vperm.xlu1 %2059, %v301_v23   ;;  %v300_v30 = vld [vmem:[%s2324_s18 + $0x8] sm:$0xff]  ;;  %v2354_v35 = vsub.f32 %v357_v15, %v2330_v22  ;;  %v303_v39 = vld [vmem:[%s2324_s18 + $0x20] sm:$0xff]  ;;  %v306_v45 = vld [vmem:[%s2324_s18 + $0x38] sm:$0xff] }
  0x19   : > { %1860 = vmatpush3.msra.mxu0 %v2275_v5  ;;  %v2339_v27 = vand.u32 4294901760, %v2306_v16  ;;  %310 = vperm.xlu0 %2058, %v299_v24   ;;  %v2351_v34 = vand.u32 4294901760, %v2327_v21  ;;  %v2361_v37 = vand.u32 4294901760, %v2343_v28  ;;  %v304_v38 = vld [vmem:[%s2324_s18 + $0x28] sm:$0xff]  ;;  %v305_v46 = vld [vmem:[%s2324_s18 + $0x30] sm:$0xff]  ;;  %s2108_s15 = scalar_lea.vmem %s2818_s29, 3072 }
  0x1a   : > { %v563_v25 = vsub.f32 %v2291_v11, %v2312_v18  ;;  %v570_v26 = vsub.f32 %v2294_v12, %v2315_v19  ;;  %1861 = vmatprep.subr.mxu0 %v2277_v6  ;;  %v577_v32 = vsub.f32 %v2297_v13, %v2318_v20  ;;  %v2369_v42 = vand.u32 4294901760, %v2354_v35  ;;  %p2109_p12 = scmp.ne.s32.totalorder %s2818_s29, %s2108_s15 }
  0x1b   : > { %1862 = vmatpush3.msra.mxu0 %v2277_v6  ;;  %v584_v36 = vsub.f32 %v2306_v16, %v2339_v27  ;;  %v591_v41 = vsub.f32 %v2327_v21, %v2351_v34  ;;  %v598_v44 = vsub.f32 %v2343_v28, %v2361_v37 }
  0x1c   : > { %v564_v31 = vand.u32 4294901760, %v563_v25  ;;  %v571_v33 = vand.u32 4294901760, %v570_v26  ;;  %1863 = vmatprep.subr.mxu0 %v2282_v8  ;;  %319 = vperm.xlu1 %2059, %v302_v29   ;;  %v578_v40 = vand.u32 4294901760, %v577_v32  ;;  %v605_v48 = vsub.f32 %v2354_v35, %v2369_v42  ;;  %p2110_p13 = pnand %p2109_p12, %p2253_p5 }
  0x1d   : > { %1864 = vmatpush3.msra.mxu0 %v2282_v8  ;;  %313 = vperm.xlu0 %2058, %v300_v30   ;;  %v585_v43 = vand.u32 4294901760, %v584_v36  ;;  %v592_v47 = vand.u32 4294901760, %v591_v41  ;;  %v599_v49 = vand.u32 4294901760, %v598_v44 }
  0x1e   : > { %1883 = vmatprep.subr.mxu1 %v564_v31  ;;  %1865 = vmatprep.subr.mxu0 %v2300_v14  ;;  %v606_v50 = vand.u32 4294901760, %v605_v48  ;;  %p2111_p0 = pneg %p2110_p13 }
  0x1f   : > { %1884 = vmatpush3.msra.mxu1 %v564_v31  ;;  %1866 = vmatpush3.msra.mxu0 %v2300_v14 }
  0x20   : > { %1885 = vmatprep.subr.mxu1 %v571_v33  ;;  %1867 = vmatprep.subr.mxu0 %v2309_v17 }
  0x21   : > { %1886 = vmatpush3.msra.mxu1 %v571_v33  ;;  %325 = vperm.xlu1 %2059, %v304_v38  }
  0x22   : > { %322 = vperm.xlu0 %2058, %v303_v39   ;;  %1887 = vmatprep.subr.mxu1 %v578_v40 }
  0x23   : > { %1868 = vmatpush3.msra.mxu0 %v2309_v17  ;;  %1888 = vmatpush3.msra.mxu1 %v578_v40 }
  0x24   : > { %1869 = vmatprep.subr.mxu0 %v2330_v22  ;;  %1889 = vmatprep.subr.mxu1 %v585_v43 }
  0x25   : > { %1870 = vmatpush3.msra.mxu0 %v2330_v22  ;;  %331 = vperm.xlu1 %2059, %v306_v45  }
  0x26   : > { %328 = vperm.xlu0 %2058, %v305_v46   ;;  %1890 = vmatpush3.msra.mxu1 %v585_v43 }
  0x27   : > { %1909 = vmatprep.subr.mxu0 %v2291_v11  ;;  %1891 = vmatprep.subr.mxu1 %v592_v47 }
  0x28   : > { %1892 = vmatpush3.msra.mxu1 %v592_v47 }
  0x29   : > { %1893 = vmatprep.subr.mxu1 %v599_v49 }
  0x2a   : > { %1894 = vmatpush3.msra.mxu1 %v599_v49 }
  0x2b   : > { %1895 = vmatprep.subr.mxu1 %v606_v50 }
  0x2c   : > { %1896 = vmatpush3.msra.mxu1 %v606_v50 }
  0x2d   : > { %1935 = vmatprep.subr.mxu1 %v2273_v4 }
  0x93   : > { %v317_v53 = vpop.permute.xlu1 %316 }
  0x94   : > { %v311_v54 = vpop.permute.xlu0 %310  ;;  %vm335_vm1 = vcmp.eq.s32.totalorder %v317_v53, %v308_v52 }
  0x95   : > { %vm333_vm2 = vcmp.eq.s32.totalorder %v311_v54, %v308_v52  ;;  %v2384_v56 = vsel %vm335_vm1, 1.0, %v2171_v55 }
  0x96   : > { %v2386_v57 = vsel %vm333_vm2, 1.0, %v2171_v55  ;;  %v372_v58 = vsel %vm364_vm0, %v2384_v56, 0 }
  0x97   : > { %1897 = vmatprep.mubr.msk.f32.mxu1 %vm364_vm0, %v2386_v57  ;;  %v366_v59 = vsel %vm364_vm0, %v2386_v57, 0  ;;  %v2394_v60 = vsub.f32 %v372_v58, %v372_v58  ;;  %v320_v61 = vpop.permute.xlu1 %319 }
  0x98   : > { %v314_v62 = vpop.permute.xlu0 %313  ;;  %v2396_v63 = vsub.f32 %v366_v59, %v366_v59  ;;  %vm336_vm3 = vcmp.eq.s32.totalorder %v320_v61, %v308_v52 }
  0x99   : > { %vm334_vm4 = vcmp.eq.s32.totalorder %v314_v62, %v308_v52  ;;  %v2398_v0 = vsel %vm336_vm3, 1.0, %v2171_v55  ;;  %v483_v25 = vand.u32 4294901760, %v2394_v60 }
  0x9a   : > { %v2400_v1 = vsel %vm334_vm4, 1.0, %v2171_v55  ;;  %v463_v2 = vand.u32 4294901760, %v2396_v63  ;;  %v375_v3 = vsel %vm364_vm0, %v2398_v0, 0 }
  0x9b   : > { %v369_v7 = vsel %vm364_vm0, %v2400_v1, 0  ;;  %1898 = vmatmul.mubr.msk.f32.vlgmr.msra.gmra.mxu1 %vm364_vm0, %v2400_v1  ;;  %v2409_v9 = vsub.f32 %v375_v3, %v375_v3  ;;  %v484_v43 = vsub.f32 %v2394_v60, %v483_v25 }
  0x9c   : > { %v2411_v10 = vsub.f32 %v369_v7, %v369_v7  ;;  %v326_v15 = vpop.permute.xlu1 %325  ;;  %1900 = vmatprep.mubr.msk.f32.mxu1 %vm364_vm0, %v2384_v56  ;;  %1936 = vmatpush3.msra.mxu1 %v2273_v4  ;;  %v464_v24 = vsub.f32 %v2396_v63, %v463_v2 }
  0x9d   : > { %v323_v23 = vpop.permute.xlu0 %322  ;;  %vm338_vm5 = vcmp.eq.s32.totalorder %v326_v15, %v308_v52  ;;  %1937 = vmatprep.subr.mxu1 %v2275_v5  ;;  %v493_v36 = vand.u32 4294901760, %v2409_v9  ;;  %v485_v53 = vand.u32 4294901760, %v484_v43 }
  0x9e   : > { %vm337_vm6 = vcmp.eq.s32.totalorder %v323_v23, %v308_v52  ;;  %v2421_v26 = vsel %vm338_vm5, 1.0, %v2171_v55  ;;  %v465_v30 = vand.u32 4294901760, %v464_v24  ;;  %1938 = vmatpush3.msra.mxu1 %v2275_v5  ;;  %v473_v31 = vand.u32 4294901760, %v2411_v10 }
  0x9f   : > { %v2423_v29 = vsel %vm337_vm6, 1.0, %v2171_v55  ;;  %v381_v32 = vsel %vm364_vm0, %v2421_v26, 0  ;;  %1901 = vmatmul.mubr.msk.f32.gmra.mxu1 %vm364_vm0, %v2398_v0  ;;  %1939 = vmatprep.subr.mxu1 %v2277_v6  ;;  %v494_v51 = vsub.f32 %v2409_v9, %v493_v36 }
  0xa0   : > { %v378_v33 = vsel %vm364_vm0, %v2423_v29, 0  ;;  %v332_v39 = vpop.permute.xlu1 %331  ;;  %1871 = vmatprep.mubr.f32.mxu0 %v465_v30  ;;  %1903 = vmatprep.mubr.msk.f32.mxu1 %vm364_vm0, %v2423_v29  ;;  %v474_v41 = vsub.f32 %v2411_v10, %v473_v31  ;;  %v2443_v44 = vsub.f32 %v381_v32, %v381_v32 }
  0xa1   : > { %v2435_v38 = vsub.f32 %v378_v33, %v378_v33  ;;  %v329_v40 = vpop.permute.xlu0 %328  ;;  %vm340_vm7 = vcmp.eq.s32.totalorder %v332_v39, %v308_v52  ;;  %1940 = vmatpush3.msra.mxu1 %v2277_v6  ;;  %v495_v61 = vand.u32 4294901760, %v494_v51 }
  0xa2   : > { %vm339_vm8 = vcmp.eq.s32.totalorder %v329_v40, %v308_v52  ;;  %v2446_v45 = vsel %vm340_vm7, 1.0, %v2171_v55  ;;  %1941 = vmatprep.subr.mxu1 %v2282_v8  ;;  %v475_v47 = vand.u32 4294901760, %v474_v41 }
  0xa3   : > { %v2448_v46 = vsel %vm339_vm8, 1.0, %v2171_v55  ;;  %v503_v48 = vand.u32 4294901760, %v2435_v38  ;;  %v387_v49 = vsel %vm364_vm0, %v2446_v45, 0  ;;  %1904 = vmatmul.mubr.msk.f32.gmra.mxu1 %vm364_vm0, %v2421_v26  ;;  %v513_v55 = vand.u32 4294901760, %v2443_v44 }
  0xa4   : > { %v384_v50 = vsel %vm364_vm0, %v2448_v46, 0  ;;  %1872 = vmatmul.mubr.f32.vlgmr.msra.gmra.mxu0 %v475_v47  ;;  %1906 = vmatprep.mubr.msk.f32.mxu1 %vm364_vm0, %v2448_v46  ;;  %v2469_v58 = vsub.f32 %v387_v49, %v387_v49 }
  0xa5   : > { %v2461_v52 = vsub.f32 %v384_v50, %v384_v50  ;;  %v504_v54 = vsub.f32 %v2435_v38, %v503_v48  ;;  %1910 = vmatpush3.msra.mxu0 %v2291_v11  ;;  %1942 = vmatpush3.msra.mxu1 %v2282_v8  ;;  %v514_v3 = vsub.f32 %v2443_v44, %v513_v55 }
  0xa6   : > { %1874 = vmatprep.mubr.f32.mxu0 %v485_v53  ;;  %1943 = vmatprep.subr.mxu1 %v2300_v14  ;;  %v533_v7 = vand.u32 4294901760, %v2469_v58 }
  0xa7   : > { %v523_v59 = vand.u32 4294901760, %v2461_v52  ;;  %1911 = vmatprep.subr.mxu0 %v2294_v12  ;;  %1944 = vmatpush3.msra.mxu1 %v2300_v14  ;;  %v505_v62 = vand.u32 4294901760, %v504_v54  ;;  %v515_v15 = vand.u32 4294901760, %v514_v3 }
  0xa8   : > { %1907 = vmatmul.mubr.msk.f32.gmra.mxu1 %vm364_vm0, %v2446_v45  ;;  %1912 = vmatpush3.msra.mxu0 %v2294_v12  ;;  %v534_v23 = vsub.f32 %v2469_v58, %v533_v7 }
  0xa9   : > { %v524_v11 = vsub.f32 %v2461_v52, %v523_v59  ;;  %1945 = vmatprep.subr.mxu1 %v2309_v17  ;;  %1875 = vmatmul.mubr.f32.gmra.mxu0 %v495_v61 }
  0xaa   : > { %1913 = vmatprep.subr.mxu0 %v2297_v13  ;;  %1946 = vmatpush3.msra.mxu1 %v2309_v17 }
  0xab   : > { %1949 = vmatprep.mubr.f32.mxu1 %v463_v2  ;;  %1877 = vmatprep.mubr.f32.mxu0 %v505_v62  ;;  %v525_v12 = vand.u32 4294901760, %v524_v11 }
  0xac   : > { %1914 = vmatpush3.msra.mxu0 %v2297_v13  ;;  %1947 = vmatprep.subr.mxu1 %v2330_v22  ;;  %v535_v13 = vand.u32 4294901760, %v534_v23 }
  0xad   : > { %1915 = vmatprep.subr.mxu0 %v2306_v16  ;;  %1948 = vmatpush3.msra.mxu1 %v2330_v22 }
  0xae   : > { %1916 = vmatpush3.msra.mxu0 %v2306_v16  ;;  %1950 = vmatmul.mubr.f32.vlgmr.msra.gmra.mxu1 %v473_v31 }
  0xaf   : > { %1878 = vmatmul.mubr.f32.gmra.mxu0 %v515_v15  ;;  %1952 = vmatprep.mubr.f32.mxu1 %v483_v25 }
  0xb0   : > { %1880 = vmatprep.mubr.f32.mxu0 %v525_v12  ;;  %1917 = vmatprep.subr.mxu0 %v2327_v21 }
  0xb1   : > { %1987 = vmatprep.subr.mxu1 %v2273_v4  ;;  %1918 = vmatpush3.msra.mxu0 %v2327_v21 }
  0xb2   : > { %1988 = vmatpush3.msra.mxu1 %v2273_v4  ;;  %1919 = vmatprep.subr.mxu0 %v2343_v28 }
  0xb3   : > { %1953 = vmatmul.mubr.f32.gmra.mxu1 %v493_v36  ;;  %1989 = vmatprep.subr.mxu1 %v2275_v5 }
  0xb4   : > { %1881 = vmatmul.mubr.f32.gmra.mxu0 %v535_v13  ;;  %1955 = vmatprep.mubr.f32.mxu1 %v503_v48 }
  0xb5   : > { %1920 = vmatpush3.msra.mxu0 %v2343_v28  ;;  %1990 = vmatpush3.msra.mxu1 %v2275_v5 }
  0xb6   : > { %1921 = vmatprep.subr.mxu0 %v2354_v35  ;;  %1923 = vmatprep.mubr.f32.mxu0 %v2396_v63 }
  0xb7   : > { %1991 = vmatprep.subr.mxu1 %v2277_v6  ;;  %1922 = vmatpush3.msra.mxu0 %v2354_v35 }
  0xb8   : > { %1992 = vmatpush3.msra.mxu1 %v2277_v6  ;;  %1961 = vmatprep.subr.mxu0 %v2312_v18 }
  0xb9   : > { %1956 = vmatmul.mubr.f32.gmra.mxu1 %v513_v55  ;;  %1993 = vmatprep.subr.mxu1 %v2282_v8 }
  0xba   : > { %1924 = vmatmul.mubr.f32.vlgmr.msra.gmra.mxu0 %v2411_v10  ;;  %1958 = vmatprep.mubr.f32.mxu1 %v523_v59 }
  0xbb   : > { %1962 = vmatpush3.msra.mxu0 %v2312_v18  ;;  %1994 = vmatpush3.msra.mxu1 %v2282_v8 }
  0xbc   : > { %1926 = vmatprep.mubr.f32.mxu0 %v2394_v60  ;;  %1995 = vmatprep.subr.mxu1 %v2300_v14 }
  0xbd   : > { %1963 = vmatprep.subr.mxu0 %v2315_v19  ;;  %1996 = vmatpush3.msra.mxu1 %v2300_v14 }
  0xbe   : > { %1959 = vmatmul.mubr.f32.gmra.mxu1 %v533_v7  ;;  %1964 = vmatpush3.msra.mxu0 %v2315_v19 }
  0xbf   : > { %1997 = vmatprep.subr.mxu1 %v2309_v17  ;;  %1927 = vmatmul.mubr.f32.gmra.mxu0 %v2409_v9 }
  0xc0   : > { %1965 = vmatprep.subr.mxu0 %v2318_v20  ;;  %1998 = vmatpush3.msra.mxu1 %v2309_v17 }
  0xc1   : > { %2001 = vmatprep.mubr.msk.f32.mxu1 %vm364_vm0, %v2386_v57  ;;  %1929 = vmatprep.mubr.f32.mxu0 %v2435_v38 }
  0xc2   : > { %1966 = vmatpush3.msra.mxu0 %v2318_v20  ;;  %1999 = vmatprep.subr.mxu1 %v2330_v22 }
  0xc3   : > { %1967 = vmatprep.subr.mxu0 %v2339_v27  ;;  %2000 = vmatpush3.msra.mxu1 %v2330_v22 }
  0xc4   : > { %1968 = vmatpush3.msra.mxu0 %v2339_v27  ;;  %2002 = vmatmul.mubr.msk.f32.vlgmr.msra.gmra.mxu1 %vm364_vm0, %v2400_v1 }
  0xc5   : > { %1930 = vmatmul.mubr.f32.gmra.mxu0 %v2443_v44  ;;  %2004 = vmatprep.mubr.msk.f32.mxu1 %vm364_vm0, %v2384_v56 }
  0xc6   : > { %1932 = vmatprep.mubr.f32.mxu0 %v2461_v52  ;;  %1969 = vmatprep.subr.mxu0 %v2351_v34 }
  0xc7   : > { %1970 = vmatpush3.msra.mxu0 %v2351_v34 }
  0xc8   : > { %1971 = vmatprep.subr.mxu0 %v2361_v37  ;;  %2005 = vmatmul.mubr.msk.f32.gmra.mxu1 %vm364_vm0, %v2398_v0 }
  0xc9   : > { %1933 = vmatmul.mubr.f32.gmra.mxu0 %v2469_v58  ;;  %2007 = vmatprep.mubr.msk.f32.mxu1 %vm364_vm0, %v2423_v29 }
  0xca   : > { %1972 = vmatpush3.msra.mxu0 %v2361_v37  ;;  %1975 = vmatprep.mubr.msk.f32.mxu0 %vm364_vm0, %v2386_v57 }
  0xcb   : > { %1973 = vmatprep.subr.mxu0 %v2369_v42 }
  0xcc   : > { %1974 = vmatpush3.msra.mxu0 %v2369_v42  ;;  %2008 = vmatmul.mubr.msk.f32.gmra.mxu1 %vm364_vm0, %v2421_v26 }
  0xcd   : > { %1976 = vmatmul.mubr.msk.f32.vlgmr.msra.gmra.mxu0 %vm364_vm0, %v2400_v1  ;;  %2010 = vmatprep.mubr.msk.f32.mxu1 %vm364_vm0, %v2448_v46 }
  0xce   : > { %1978 = vmatprep.mubr.msk.f32.mxu0 %vm364_vm0, %v2384_v56 }
  0xd0   : > { %2011 = vmatmul.mubr.msk.f32.gmra.mxu1 %vm364_vm0, %v2446_v45 }
  0xd1   : > { %1979 = vmatmul.mubr.msk.f32.gmra.mxu0 %vm364_vm0, %v2398_v0 }
  0xd2   : > { %1981 = vmatprep.mubr.msk.f32.mxu0 %vm364_vm0, %v2423_v29 }
  0xd5   : > { %1982 = vmatmul.mubr.msk.f32.gmra.mxu0 %vm364_vm0, %v2421_v26 }
  0xd6   : > { %1984 = vmatprep.mubr.msk.f32.mxu0 %vm364_vm0, %v2448_v46 }
  0xd9   : > { %1985 = vmatmul.mubr.msk.f32.gmra.mxu0 %vm364_vm0, %v2446_v45 }
 0x15b   : > { %v1899_v4 = vpop.f32.mrf.mxu1 }
 0x15d   : > { %v643_v5 = vpop.f32.mrf.mxu1 }
 0x15f   : > { %v1902_v6 = vpop.f32.mrf.mxu1 }
 0x161   : > { %v655_v8 = vpop.f32.mrf.mxu1 }
 0x163   : > { %v1905_v14 = vpop.f32.mrf.mxu1 }
 0x164   : > { %v1873_v16 = vpop.f32.mrf.mxu0 }
 0x165   : > { %v667_v17 = vpop.f32.mrf.mxu1  ;;  %v650_v29 = vadd.f32 %v1899_v4, %v1873_v16 }
 0x166   : > { %v467_v18 = vpop.f32.mrf.mxu0 }
 0x167   : > { %v644_v32 = vadd.f32 %v643_v5, %v467_v18 }
 0x168   : > { %v1908_v19 = vpop.f32.mrf.mxu1 }
 0x169   : > { %v1876_v20 = vpop.f32.mrf.mxu0 }
 0x16a   : > { %v679_v21 = vpop.f32.mrf.mxu1  ;;  %v662_v39 = vadd.f32 %v1902_v6, %v1876_v20 }
 0x16b   : > { %v487_v22 = vpop.f32.mrf.mxu0 }
 0x16c   : > { %v656_v47 = vadd.f32 %v655_v8, %v487_v22 }
 0x16e   : > { %v1951_v27 = vpop.f32.mrf.mxu1 }
 0x16f   : > { %v1879_v28 = vpop.f32.mrf.mxu0 }
 0x170   : > { %v900_v34 = vpop.f32.mrf.mxu1  ;;  %v674_v61 = vadd.f32 %v1905_v14, %v1879_v28 }
 0x171   : > { %v507_v35 = vpop.f32.mrf.mxu0 }
 0x172   : > { %v668_v50 = vadd.f32 %v667_v17, %v507_v35 }
 0x173   : > { %v1954_v37 = vpop.f32.mrf.mxu1 }
 0x174   : > { %v1882_v42 = vpop.f32.mrf.mxu0 }
 0x175   : > { %v916_v56 = vpop.f32.mrf.mxu1  ;;  %v686_v13 = vadd.f32 %v1908_v19, %v1882_v42 }
 0x176   : > { %v527_v57 = vpop.f32.mrf.mxu0 }
 0x177   : > { %v680_v12 = vadd.f32 %v679_v21, %v527_v57 }
 0x179   : > { %v1957_v60 = vpop.f32.mrf.mxu1 }
 0x17a   : > { %v1925_v63 = vpop.f32.mrf.mxu0 }
 0x17b   : > { %v932_v0 = vpop.f32.mrf.mxu1  ;;  %v779_v33 = vadd.f32 %v1925_v63, %v650_v29 }
 0x17c   : > { %v771_v1 = vpop.f32.mrf.mxu0 }
 0x17d   : > { %v772_v40 = vadd.f32 %v771_v1, %v644_v32  ;;  %v909_v44 = vadd.f32 %v1951_v27, %v779_v33 }
 0x17e   : > { %v1960_v2 = vpop.f32.mrf.mxu1 }
 0x17f   : > { %v1928_v9 = vpop.f32.mrf.mxu0  ;;  %v901_v49 = vadd.f32 %v900_v34, %v772_v40 }
 0x180   : > { %v948_v10 = vpop.f32.mrf.mxu1  ;;  %v793_v43 = vadd.f32 %v1928_v9, %v662_v39 }
 0x181   : > { %v785_v24 = vpop.f32.mrf.mxu0 }
 0x182   : > { %v786_v52 = vadd.f32 %v785_v24, %v656_v47  ;;  %v925_v54 = vadd.f32 %v1954_v37, %v793_v43  ;;  %v2582_v24 = vld [vmem:[%s2874_s4 + $0x8] sm:$0xff] }
 0x184   : > { %v2003_v25 = vpop.f32.mrf.mxu1  ;;  %v917_v23 = vadd.f32 %v916_v56, %v786_v52 }
 0x185   : > { %v1931_v26 = vpop.f32.mrf.mxu0 }
 0x186   : > { %v1168_v30 = vpop.f32.mrf.mxu1  ;;  %v807_v15 = vadd.f32 %v1931_v26, %v674_v61 }
 0x187   : > { %v799_v31 = vpop.f32.mrf.mxu0 }
 0x188   : > { %v2006_v36 = vpop.f32.mrf.mxu1  ;;  %v800_v62 = vadd.f32 %v799_v31, %v668_v50  ;;  %v941_v22 = vadd.f32 %v1957_v60, %v807_v15  ;;  %v1218_v60 = vld [vmem:[%s2873_s3] sm:$0xff] }
 0x189   : > { %v1934_v38 = vpop.f32.mrf.mxu0 }
 0x18a   : > { %v1180_v45 = vpop.f32.mrf.mxu1  ;;  %v933_v16 = vadd.f32 %v932_v0, %v800_v62  ;;  %v821_v20 = vadd.f32 %v1934_v38, %v686_v13 }
 0x18b   : > { %v813_v41 = vpop.f32.mrf.mxu0 }
 0x18c   : > { %v2009_v58 = vpop.f32.mrf.mxu1  ;;  %v814_v6 = vadd.f32 %v813_v41, %v680_v12  ;;  %v957_v57 = vadd.f32 %v1960_v2, %v821_v20  ;;  %v1219_v2 = vld [vmem:[%s2873_s3 + $0x8] sm:$0xff] }
 0x18d   : > { %v1977_v46 = vpop.f32.mrf.mxu0 }
 0x18e   : > { %v1055_v48 = vadd.f32 %v1977_v46, %v909_v44  ;;  %v1192_v4 = vpop.f32.mrf.mxu1  ;;  %v949_v35 = vadd.f32 %v948_v10, %v814_v6  ;;  %v1220_v10 = vld [vmem:[%s2874_s4] sm:$0xff] }
 0x18f   : > { %v1048_v51 = vpop.f32.mrf.mxu0 }
 0x190   : > { %v1049_v53 = vadd.f32 %v1048_v51, %v901_v49  ;;  %v1175_v55 = vadd.f32 %v2003_v25, %v1055_v48  ;;  %v2012_v27 = vpop.f32.mrf.mxu1 }
 0x191   : > { %v1980_v59 = vpop.f32.mrf.mxu0 }
 0x192   : > { %v1067_v11 = vadd.f32 %v1980_v59, %v925_v54  ;;  %1226 = vadd.xlane.f32.xlu1 %v1175_v55  ;;  %v1169_v3 = vadd.f32 %v1168_v30, %v1049_v53  ;;  %v1204_v42 = vpop.f32.mrf.mxu1 }
 0x193   : > { %v1060_v7 = vpop.f32.mrf.mxu0 }
 0x194   : > { %1224 = vadd.xlane.f32.xlu0 %v1169_v3  ;;  %v1061_v8 = vadd.f32 %v1060_v7, %v917_v23  ;;  %v1187_v17 = vadd.f32 %v2006_v36, %v1067_v11 }
 0x195   : > { %v1983_v5 = vpop.f32.mrf.mxu0 }
 0x196   : > { %v1079_v34 = vadd.f32 %v1983_v5, %v941_v22  ;;  %v1181_v37 = vadd.f32 %v1180_v45, %v1061_v8 }
 0x197   : > { %v1072_v18 = vpop.f32.mrf.mxu0 }
 0x198   : > { %v1073_v14 = vadd.f32 %v1072_v18, %v933_v16  ;;  %1230 = vadd.xlane.f32.xlu0 %v1187_v17  ;;  %v1199_v0 = vadd.f32 %v2009_v58, %v1079_v34 }
 0x199   : > { %v1986_v28 = vpop.f32.mrf.mxu0 }
 0x19a   : > { %v1193_v21 = vadd.f32 %v1192_v4, %v1073_v14  ;;  %v1091_v63 = vadd.f32 %v1986_v28, %v957_v57 }
 0x19b   : > { %v1084_v56 = vpop.f32.mrf.mxu0 }
 0x19c   : > { %v1085_v19 = vadd.f32 %v1084_v56, %v949_v35  ;;  %1232 = vadd.xlane.f32.xlu1 %v1193_v21  ;;  %1228 = vadd.xlane.f32.xlu0 %v1181_v37  ;;  %v1211_v9 = vadd.f32 %v2012_v27, %v1091_v63 }
 0x19e   : > { %v1205_v1 = vadd.f32 %v1204_v42, %v1085_v19 }
 0x1a0   : > { %1234 = vadd.xlane.f32.xlu0 %v1199_v0  ;;  %1236 = vadd.xlane.f32.xlu1 %v1205_v1 }
 0x1a4   : > { %1238 = vadd.xlane.f32.xlu0 %v1211_v9  ;;  %1422 = vadd.xlane.f32.xlu1 %v1218_v60 }
 0x1a8   : > { %1424 = vadd.xlane.f32.xlu0 %v1219_v2  ;;  %1430 = vadd.xlane.f32.xlu1 %v1220_v10 }
 0x1ac   : > { %1432 = vadd.xlane.f32.xlu0 %v2582_v24 }
 0x21b   : > { %v1227_v25 = vpop.xlane.xlu1 %1226 }
 0x21c   : > { %v1242_v26 = vmul.f32 0.0078125, %v1227_v25 }
 0x21d   : > { %v1225_v29 = vpop.xlane.xlu0 %1224 }
 0x21e   : > { %v2585_v30 = vsub.f32 %v1175_v55, %v1242_v26  ;;  %v1241_v31 = vmul.f32 0.0078125, %v1225_v29 }
 0x220   : > { %v2587_v32 = vsub.f32 %v1169_v3, %v1241_v31  ;;  %v1258_v33 = vmul.f32 %v2585_v30, %v2585_v30 }
 0x221   : > { %v1231_v36 = vpop.xlane.xlu0 %1230 }
 0x222   : > { %v1244_v38 = vmul.f32 0.0078125, %v1231_v36  ;;  %1267 = vadd.xlane.f32.xlu0 %v1258_v33  ;;  %v1257_v39 = vmul.f32 %v2587_v32, %v2587_v32 }
 0x224   : > { %v2593_v40 = vsub.f32 %v1187_v17, %v1244_v38  ;;  %1265 = vadd.xlane.f32.xlu1 %v1257_v39 }
 0x225   : > { %v1233_v41 = vpop.xlane.xlu1 %1232  ;;  %v1229_v43 = vpop.xlane.xlu0 %1228 }
 0x226   : > { %v1245_v44 = vmul.f32 0.0078125, %v1233_v41  ;;  %v1243_v45 = vmul.f32 0.0078125, %v1229_v43  ;;  %v1260_v46 = vmul.f32 %v2593_v40, %v2593_v40 }
 0x228   : > { %v2597_v47 = vsub.f32 %v1181_v37, %v1243_v45  ;;  %1271 = vadd.xlane.f32.xlu0 %v1260_v46  ;;  %v2599_v50 = vsub.f32 %v1193_v21, %v1245_v44 }
 0x229   : > { %v1235_v48 = vpop.xlane.xlu0 %1234  ;;  %v1237_v49 = vpop.xlane.xlu1 %1236 }
 0x22a   : > { %v1246_v51 = vmul.f32 0.0078125, %v1235_v48  ;;  %v1247_v52 = vmul.f32 0.0078125, %v1237_v49  ;;  %v1259_v53 = vmul.f32 %v2597_v47, %v2597_v47  ;;  %v1261_v3 = vmul.f32 %v2599_v50, %v2599_v50 }
 0x22c   : > { %v2603_v54 = vsub.f32 %v1199_v0, %v1246_v51  ;;  %1269 = vadd.xlane.f32.xlu1 %v1259_v53  ;;  %v2605_v55 = vsub.f32 %v1205_v1, %v1247_v52 }
 0x22d   : > { %v1239_v58 = vpop.xlane.xlu0 %1238  ;;  %v1423_v59 = vpop.xlane.xlu1 %1422 }
 0x22e   : > { %v1248_v61 = vmul.f32 0.0078125, %v1239_v58  ;;  %v1426_v62 = vmul.f32 0.0078125, %v1423_v59  ;;  %v1262_v11 = vmul.f32 %v2603_v54, %v2603_v54  ;;  %v1263_v13 = vmul.f32 %v2605_v55, %v2605_v55 }
 0x230   : > { %v2611_v7 = vsub.f32 %v1211_v9, %v1248_v61  ;;  %v1428_v12 = vsub.f32 %v1218_v60, %v1426_v62  ;;  %1275 = vadd.xlane.f32.xlu0 %v1262_v11  ;;  %1273 = vadd.xlane.f32.xlu1 %v1261_v3 }
 0x231   : > { %v1425_v15 = vpop.xlane.xlu0 %1424  ;;  %v1431_v23 = vpop.xlane.xlu1 %1430 }
 0x232   : > { %v1427_v4 = vmul.f32 0.0078125, %v1425_v15  ;;  %v1434_v5 = vmul.f32 0.0078125, %v1431_v23  ;;  %v1264_v6 = vmul.f32 %v2611_v7, %v2611_v7  ;;  %v2618_v8 = vadd.f32 %v1428_v12, %v2599_v50 }
 0x233   : > { %v2621_v16 = vadd.f32 %v1428_v12, %v2587_v32  ;;  %v2638_v35 = vadd.f32 %v1428_v12, %v2597_v47  ;;  %v2694_v44 = vadd.f32 %v1428_v12, %v2605_v55 }
 0x234   : > { %v1429_v17 = vsub.f32 %v1219_v2, %v1427_v4  ;;  %v1436_v18 = vsub.f32 %v1220_v10, %v1434_v5  ;;  %1279 = vadd.xlane.f32.xlu0 %v1264_v6  ;;  %1277 = vadd.xlane.f32.xlu1 %v1263_v13  ;;  %v1450_v20 = vmul.f32 %v2618_v8, %v2618_v8  ;;  %v1740_v4 = vld [vmem:[%s2702_s16] ss:$0 sm:$0xff] }
 0x235   : > { %v1446_v22 = vmul.f32 %v2621_v16, %v2621_v16  ;;  %v1448_v21 = vmul.f32 %v2638_v35, %v2638_v35  ;;  %v1433_v56 = vpop.xlane.xlu0 %1432  ;;  %v1452_v45 = vmul.f32 %v2694_v44, %v2694_v44 }
 0x236   : > { %v2628_v14 = vadd.f32 %v1429_v17, %v2585_v30  ;;  %v2631_v27 = vadd.f32 %v1436_v18, %v2605_v55  ;;  %v2643_v37 = vadd.f32 %v1429_v17, %v2593_v40  ;;  %v1435_v57 = vmul.f32 0.0078125, %v1433_v56 }
 0x237   : > { %v2648_v42 = vadd.f32 %v1429_v17, %v2603_v54  ;;  %v2654_v1 = vadd.f32 %v1436_v18, %v2587_v32  ;;  %v2664_v10 = vadd.f32 %v1436_v18, %v2597_v47  ;;  %v2674_v29 = vadd.f32 %v1436_v18, %v2599_v50 }
 0x238   : > { %1462 = vadd.xlane.f32.xlu1 %v1450_v20  ;;  %1454 = vadd.xlane.f32.xlu0 %v1446_v22  ;;  %v1447_v28 = vmul.f32 %v2628_v14, %v2628_v14  ;;  %v1540_v34 = vmul.f32 %v2631_v27, %v2631_v27  ;;  %v1449_v19 = vmul.f32 %v2643_v37, %v2643_v37 }
 0x239   : > { %v1437_v63 = vsub.f32 %v2582_v24, %v1435_v57  ;;  %v1451_v0 = vmul.f32 %v2648_v42, %v2648_v42  ;;  %v1534_v60 = vmul.f32 %v2654_v1, %v2654_v1  ;;  %v1536_v24 = vmul.f32 %v2664_v10, %v2664_v10 }
 0x23a   : > { %v1538_v31 = vmul.f32 %v2674_v29, %v2674_v29  ;;  %v2684_v38 = vadd.f32 %v1429_v17, %v2611_v7 }
 0x23b   : > { %v2659_v9 = vadd.f32 %v1437_v63, %v2585_v30  ;;  %v2669_v25 = vadd.f32 %v1437_v63, %v2593_v40  ;;  %v2679_v33 = vadd.f32 %v1437_v63, %v2603_v54  ;;  %v2689_v41 = vadd.f32 %v1437_v63, %v2611_v7 }
 0x23c   : > { %1456 = vadd.xlane.f32.xlu0 %v1447_v28  ;;  %1554 = vadd.xlane.f32.xlu1 %v1540_v34  ;;  %v1453_v39 = vmul.f32 %v2684_v38, %v2684_v38 }
 0x23d   : > { %v1535_v2 = vmul.f32 %v2659_v9, %v2659_v9  ;;  %v1537_v26 = vmul.f32 %v2669_v25, %v2669_v25  ;;  %v1539_v36 = vmul.f32 %v2679_v33, %v2679_v33  ;;  %v1541_v43 = vmul.f32 %v2689_v41, %v2689_v41 }
 0x240   : > { %1458 = vadd.xlane.f32.xlu0 %v1448_v21 }
 0x244   : > { %1460 = vadd.xlane.f32.xlu0 %v1449_v19 }
 0x248   : > { %1464 = vadd.xlane.f32.xlu0 %v1451_v0 }
 0x24c   : > { %1542 = vadd.xlane.f32.xlu0 %v1534_v60 }
 0x250   : > { %1544 = vadd.xlane.f32.xlu0 %v1535_v2 }
 0x254   : > { %1546 = vadd.xlane.f32.xlu0 %v1536_v24 }
 0x258   : > { %1548 = vadd.xlane.f32.xlu0 %v1537_v26  ;;  %v1741_v26 = vld [vmem:[%s2702_s16 + $0x1] ss:$0 sm:$0xff] }
 0x25c   : > { %1550 = vadd.xlane.f32.xlu0 %v1538_v31 }
 0x260   : > { %1552 = vadd.xlane.f32.xlu0 %v1539_v36 }
 0x264   : > { %1468 = vadd.xlane.f32.xlu0 %v1453_v39 }
 0x268   : > { %1556 = vadd.xlane.f32.xlu0 %v1541_v43 }
 0x26c   : > { %1466 = vadd.xlane.f32.xlu0 %v1452_v45 }
 0x2ab   : > { %v1268_v46 = vpop.xlane.xlu0 %1267 }
 0x2ac   : > { %v1282_v48 = vmul.f32 0.0078125, %v1268_v46 }
 0x2ad   : > { %v1266_v49 = vpop.xlane.xlu1 %1265 }
 0x2ae   : > { %v1290_v51 = vadd.f32 1e-12, %v1282_v48  ;;  %v1281_v52 = vmul.f32 0.0078125, %v1266_v49 }
 0x2b0   : > { %2060 = vrsqrt.f32 %v1290_v51  ;;  %v1289_v53 = vadd.f32 1e-12, %v1281_v52 }
 0x2b1   : > { %v1272_v58 = vpop.xlane.xlu0 %1271 }
 0x2b2   : > { %2062 = vrsqrt.f32 %v1289_v53  ;;  %v1284_v59 = vmul.f32 0.0078125, %v1272_v58 }
 0x2b4   : > { %v1292_v61 = vadd.f32 1e-12, %v1284_v59  ;;  %v1742_v59 = vld [vmem:[%s2702_s16 + $0x2] ss:$0 sm:$0xff] }
 0x2b5   : > { %v1270_v62 = vpop.xlane.xlu1 %1269 }
 0x2b6   : > { %2064 = vrsqrt.f32 %v1292_v61  ;;  %v1283_v11 = vmul.f32 0.0078125, %v1270_v62 }
 0x2b8   : > { %v1291_v3 = vadd.f32 1e-12, %v1283_v11 }
 0x2b9   : > { %v1276_v12 = vpop.xlane.xlu0 %1275  ;;  %v1274_v15 = vpop.xlane.xlu1 %1273 }
 0x2ba   : > { %2066 = vrsqrt.f32 %v1291_v3  ;;  %v1286_v23 = vmul.f32 0.0078125, %v1276_v12  ;;  %v1285_v13 = vmul.f32 0.0078125, %v1274_v15 }
 0x2bc   : > { %v1294_v5 = vadd.f32 1e-12, %v1286_v23  ;;  %v1293_v6 = vadd.f32 1e-12, %v1285_v13  ;;  %v1743_v13 = vld [vmem:[%s2702_s16 + $0x3] ss:$0 sm:$0xff] }
 0x2bd   : > { %v2061_v17 = vpop.eup %2060  ;;  %v1280_v18 = vpop.xlane.xlu0 %1279  ;;  %s2172_s16 = smov [#allocation2]  }
 0x2be   : > { %v1278_v20 = vpop.xlane.xlu1 %1277  ;;  %2068 = vrsqrt.f32 %v1294_v5  ;;  %v1288_v22 = vmul.f32 0.0078125, %v1280_v18  ;;  %v1330_v34 = vmul.f32 %v2061_v17, %v1740_v4  ;;  %s2112_s18 = sshll.u32 %s2172_s16, 4  ;;  %s2113_s18 = int_to_ptr.vmem [resolvable:$false] %s2112_s18 }
 0x2bf   : > { %v1287_v28 = vmul.f32 0.0078125, %v1278_v20  ;;  %v2063_v21 = vpop.eup %2062  ;;  %2070 = vrsqrt.f32 %v1293_v6  ;;  %s2114_s13 = scalar_lea.vmem %s2113_s18, 6144  ;;  %p2115_p1 = scmp.lt.s32.totalorder %s2818_s29, %s2113_s18 }
 0x2c0   : > { %v1296_v56 = vadd.f32 1e-12, %v1288_v22  ;;  %1344 = vperm.xlu1 %2059, %v1330_v34   ;;  %v1329_v2 = vmul.f32 %v2063_v21, %v1740_v4  ;;  %v2712_v21 = vld [vmem:[%s2875_s5] ss:$0 sm:$0xff]  ;;  %p2116_p2 = scmp.lt.s32.totalorder %s2114_s13, %s2108_s15 }
 0x2c1   : > { %v1295_v57 = vadd.f32 1e-12, %v1287_v28  ;;  %v1455_v19 = vpop.xlane.xlu0 %1454 }
 0x2c2   : > { %v1463_v63 = vpop.xlane.xlu1 %1462  ;;  %2072 = vrsqrt.f32 %v1296_v56  ;;  %v1470_v0 = vmul.f32 0.0078125, %v1455_v19  ;;  %p2117_p3 = por %p2116_p2, %p2115_p1 }
 0x2c3   : > { %v1474_v60 = vmul.f32 0.0078125, %v1463_v63  ;;  %v2065_v24 = vpop.eup %2064  ;;  %2074 = vrsqrt.f32 %v1295_v57  ;;  %v2720_v63 = vld [vmem:[%s2876_s6] ss:$0 sm:$0xff] }
 0x2c4   : > { %v1478_v31 = vadd.f32 1e-12, %v1470_v0  ;;  %1339 = vperm.xlu1 %2059, %v1329_v2   ;;  %v1332_v48 = vmul.f32 %v2065_v24, %v1741_v26  ;;  %p2118_p4 = pnand %p2117_p3, %p2111_p0 }
 0x2c5   : > { %v1482_v36 = vadd.f32 1e-12, %v1474_v60  ;;  %v1457_v39 = vpop.xlane.xlu0 %1456 }
 0x2c6   : > { %v1555_v43 = vpop.xlane.xlu1 %1554  ;;  %2076 = vrsqrt.f32 %v1478_v31  ;;  %v1471_v45 = vmul.f32 0.0078125, %v1457_v39 }
 0x2c7   : > { %v1564_v46 = vmul.f32 0.0078125, %v1555_v43  ;;  %v2067_v49 = vpop.eup %2066  ;;  %2078 = vrsqrt.f32 %v1482_v36 }
 0x2c8   : > { %v1479_v51 = vadd.f32 1e-12, %v1471_v45  ;;  %1354 = vperm.xlu1 %2059, %v1332_v48   ;;  %v1331_v53 = vmul.f32 %v2067_v49, %v1741_v26 }
 0x2c9   : > { %v1572_v52 = vadd.f32 1e-12, %v1564_v46  ;;  %v1459_v58 = vpop.xlane.xlu0 %1458 }
 0x2ca   : > { %2080 = vrsqrt.f32 %v1479_v51  ;;  %v1472_v61 = vmul.f32 0.0078125, %v1459_v58  ;;  %1349 = vperm.xlu0 %2058, %v1331_v53  }
 0x2cb   : > { %v2069_v62 = vpop.eup %2068  ;;  %2082 = vrsqrt.f32 %v1572_v52 }
 0x2cc   : > { %v2071_v11 = vpop.eup %2070  ;;  %v1480_v3 = vadd.f32 1e-12, %v1472_v61  ;;  %v1334_v12 = vmul.f32 %v2069_v62, %v1742_v59 }
 0x2cd   : > { %v1461_v15 = vpop.xlane.xlu0 %1460  ;;  %v1333_v23 = vmul.f32 %v2071_v11, %v1742_v59 }
 0x2ce   : > { %2084 = vrsqrt.f32 %v1480_v3  ;;  %v1473_v4 = vmul.f32 0.0078125, %v1461_v15  ;;  %1364 = vperm.xlu0 %2058, %v1334_v12  }
 0x2cf   : > { %v2073_v5 = vpop.eup %2072  ;;  %1359 = vperm.xlu1 %2059, %v1333_v23  }
 0x2d0   : > { %v2075_v6 = vpop.eup %2074  ;;  %v1481_v17 = vadd.f32 1e-12, %v1473_v4  ;;  %v1336_v18 = vmul.f32 %v2073_v5, %v1743_v13 }
 0x2d1   : > { %v1465_v20 = vpop.xlane.xlu0 %1464  ;;  %v1335_v22 = vmul.f32 %v2075_v6, %v1743_v13 }
 0x2d2   : > { %2086 = vrsqrt.f32 %v1481_v17  ;;  %v1475_v28 = vmul.f32 0.0078125, %v1465_v20  ;;  %1374 = vperm.xlu0 %2058, %v1336_v18  }
 0x2d3   : > { %v2077_v34 = vpop.eup %2076  ;;  %1369 = vperm.xlu1 %2059, %v1335_v22  }
 0x2d4   : > { %v2079_v56 = vpop.eup %2078  ;;  %v1494_v57 = vmul.f32 %v2077_v34, %v2621_v16  ;;  %v1483_v19 = vadd.f32 1e-12, %v1475_v28 }
 0x2d5   : > { %v1498_v0 = vmul.f32 %v2079_v56, %v2618_v8  ;;  %v1543_v60 = vpop.xlane.xlu0 %1542 }
 0x2d6   : > { %v1502_v2 = vmul.f32 %v2712_v21, %v1494_v57  ;;  %2088 = vrsqrt.f32 %v1483_v19  ;;  %v1558_v24 = vmul.f32 0.0078125, %v1543_v60 }
 0x2d7   : > { %v2081_v26 = vpop.eup %2080  ;;  %v1506_v31 = vmul.f32 %v2712_v21, %v1498_v0 }
 0x2d8   : > { %v2083_v36 = vpop.eup %2082  ;;  %v1510_v39 = vadd.f32 %v2720_v63, %v1502_v2  ;;  %v1495_v16 = vmul.f32 %v2081_v26, %v2628_v14  ;;  %v1566_v43 = vadd.f32 1e-12, %v1558_v24 }
 0x2d9   : > { %v1514_v45 = vadd.f32 %v2720_v63, %v1506_v31  ;;  %v1588_v46 = vmul.f32 %v2083_v36, %v2631_v27  ;;  %v1545_v48 = vpop.xlane.xlu0 %1544 }
 0x2da   : > { %1518 = vst [vmem:[%s2729_s22] sm:$0xff] %v1510_v39  ;;  %v1503_v8 = vmul.f32 %v2712_v21, %v1495_v16  ;;  %2090 = vrsqrt.f32 %v1566_v43  ;;  %v1559_v49 = vmul.f32 0.0078125, %v1545_v48 }
 0x2db   : > { %v2085_v51 = vpop.eup %2084  ;;  %1522 = vst [vmem:[%s2729_s22 + $0x60] sm:$0xff] %v1514_v45  ;;  %v1596_v14 = vmul.f32 %v2712_v21, %v1588_v46 }
 0x2dc   : > { %v1511_v52 = vadd.f32 %v2720_v63, %v1503_v8  ;;  %v1496_v27 = vmul.f32 %v2085_v51, %v2638_v35  ;;  %v1567_v53 = vadd.f32 1e-12, %v1559_v49 }
 0x2dd   : > { %v1604_v58 = vadd.f32 %v2720_v63, %v1596_v14  ;;  %v1547_v59 = vpop.xlane.xlu0 %1546 }
 0x2de   : > { %1519 = vst [vmem:[%s2729_s22 + $0x8] sm:$0xff] %v1511_v52  ;;  %v1504_v61 = vmul.f32 %v2712_v21, %v1496_v27  ;;  %2092 = vrsqrt.f32 %v1567_v53  ;;  %v1560_v62 = vmul.f32 0.0078125, %v1547_v59 }
 0x2df   : > { %v2087_v11 = vpop.eup %2086  ;;  %1760 = vst [vmem:[%s2729_s22 + $0xb0] sm:$0xff] %v1604_v58 }
 0x2e0   : > { %v1512_v3 = vadd.f32 %v2720_v63, %v1504_v61  ;;  %v1497_v12 = vmul.f32 %v2087_v11, %v2643_v37  ;;  %v1568_v15 = vadd.f32 1e-12, %v1560_v62 }
 0x2e1   : > { %v1549_v23 = vpop.xlane.xlu0 %1548 }
 0x2e2   : > { %1520 = vst [vmem:[%s2729_s22 + $0x30] sm:$0xff] %v1512_v3  ;;  %v1505_v35 = vmul.f32 %v2712_v21, %v1497_v12  ;;  %2094 = vrsqrt.f32 %v1568_v15  ;;  %v1561_v13 = vmul.f32 0.0078125, %v1549_v23 }
 0x2e3   : > { %v2089_v4 = vpop.eup %2088 }
 0x2e4   : > { %v1513_v5 = vadd.f32 %v2720_v63, %v1505_v35  ;;  %v1499_v6 = vmul.f32 %v2089_v4, %v2648_v42  ;;  %v1569_v17 = vadd.f32 1e-12, %v1561_v13 }
 0x2e5   : > { %v1551_v18 = vpop.xlane.xlu0 %1550 }
 0x2e6   : > { %1521 = vst [vmem:[%s2729_s22 + $0x38] sm:$0xff] %v1513_v5  ;;  %v1507_v20 = vmul.f32 %v2712_v21, %v1499_v6  ;;  %2096 = vrsqrt.f32 %v1569_v17  ;;  %v1562_v37 = vmul.f32 0.0078125, %v1551_v18 }
 0x2e7   : > { %v2091_v22 = vpop.eup %2090 }
 0x2e8   : > { %v1515_v28 = vadd.f32 %v2720_v63, %v1507_v20  ;;  %v1582_v34 = vmul.f32 %v2091_v22, %v2654_v1  ;;  %v1570_v56 = vadd.f32 1e-12, %v1562_v37 }
 0x2e9   : > { %v1553_v57 = vpop.xlane.xlu0 %1552 }
 0x2ea   : > { %1523 = vst [vmem:[%s2729_s22 + $0x68] sm:$0xff] %v1515_v28  ;;  %v1590_v19 = vmul.f32 %v2712_v21, %v1582_v34  ;;  %2098 = vrsqrt.f32 %v1570_v56  ;;  %v1563_v42 = vmul.f32 0.0078125, %v1553_v57 }
 0x2eb   : > { %v2093_v0 = vpop.eup %2092 }
 0x2ec   : > { %v1598_v60 = vadd.f32 %v2720_v63, %v1590_v19  ;;  %v1583_v2 = vmul.f32 %v2093_v0, %v2659_v9  ;;  %v1571_v24 = vadd.f32 1e-12, %v1563_v42 }
 0x2ed   : > { %v1469_v26 = vpop.xlane.xlu0 %1468 }
 0x2ee   : > { %1754 = vst [vmem:[%s2729_s22 + $0x20] sm:$0xff] %v1598_v60  ;;  %v1591_v31 = vmul.f32 %v2712_v21, %v1583_v2  ;;  %2100 = vrsqrt.f32 %v1571_v24  ;;  %v1477_v1 = vmul.f32 0.0078125, %v1469_v26 }
 0x2ef   : > { %v2095_v36 = vpop.eup %2094 }
 0x2f0   : > { %v1599_v39 = vadd.f32 %v2720_v63, %v1591_v31  ;;  %v1584_v16 = vmul.f32 %v2095_v36, %v2664_v10  ;;  %v1485_v43 = vadd.f32 1e-12, %v1477_v1 }
 0x2f1   : > { %v1557_v45 = vpop.xlane.xlu0 %1556 }
 0x2f2   : > { %1755 = vst [vmem:[%s2729_s22 + $0x28] sm:$0xff] %v1599_v39  ;;  %v1592_v46 = vmul.f32 %v2712_v21, %v1584_v16  ;;  %2102 = vrsqrt.f32 %v1485_v43  ;;  %v1565_v9 = vmul.f32 0.0078125, %v1557_v45 }
 0x2f3   : > { %v2097_v48 = vpop.eup %2096 }
 0x2f4   : > { %v1600_v8 = vadd.f32 %v2720_v63, %v1592_v46  ;;  %v1585_v49 = vmul.f32 %v2097_v48, %v2669_v25  ;;  %v1573_v51 = vadd.f32 1e-12, %v1565_v9 }
 0x2f5   : > { %v1467_v14 = vpop.xlane.xlu0 %1466 }
 0x2f6   : > { %1756 = vst [vmem:[%s2729_s22 + $0x50] sm:$0xff] %v1600_v8  ;;  %v1593_v52 = vmul.f32 %v2712_v21, %v1585_v49  ;;  %2104 = vrsqrt.f32 %v1573_v51  ;;  %v1476_v10 = vmul.f32 0.0078125, %v1467_v14 }
 0x2f7   : > { %v2099_v27 = vpop.eup %2098 }
 0x2f8   : > { %v1601_v53 = vadd.f32 %v2720_v63, %v1593_v52  ;;  %v1586_v58 = vmul.f32 %v2099_v27, %v2674_v29  ;;  %v1484_v59 = vadd.f32 1e-12, %v1476_v10 }
 0x2fa   : > { %1757 = vst [vmem:[%s2729_s22 + $0x58] sm:$0xff] %v1601_v53  ;;  %v1594_v61 = vmul.f32 %v2712_v21, %v1586_v58  ;;  %2106 = vrsqrt.f32 %v1484_v59 }
 0x2fb   : > { %v2101_v25 = vpop.eup %2100 }
 0x2fc   : > { %v1602_v62 = vadd.f32 %v2720_v63, %v1594_v61  ;;  %v1587_v11 = vmul.f32 %v2101_v25, %v2679_v33 }
 0x2fe   : > { %1758 = vst [vmem:[%s2729_s22 + $0x80] sm:$0xff] %v1602_v62  ;;  %v1595_v3 = vmul.f32 %v2712_v21, %v1587_v11 }
 0x2ff   : > { %v2103_v12 = vpop.eup %2102 }
 0x300   : > { %v1603_v15 = vadd.f32 %v2720_v63, %v1595_v3  ;;  %v1501_v29 = vmul.f32 %v2103_v12, %v2684_v38 }
 0x302   : > { %1759 = vst [vmem:[%s2729_s22 + $0x88] sm:$0xff] %v1603_v15  ;;  %v1509_v23 = vmul.f32 %v2712_v21, %v1501_v29 }
 0x303   : > { %v2105_v35 = vpop.eup %2104 }
 0x304   : > { %v1517_v13 = vadd.f32 %v2720_v63, %v1509_v23  ;;  %v1589_v4 = vmul.f32 %v2105_v35, %v2689_v41 }
 0x306   : > { %1525 = vst [vmem:[%s2729_s22 + $0x98] sm:$0xff] %v1517_v13  ;;  %v1597_v33 = vmul.f32 %v2712_v21, %v1589_v4 }
 0x307   : > { %v2107_v5 = vpop.eup %2106 }
 0x308   : > { %v1605_v6 = vadd.f32 %v2720_v63, %v1597_v33  ;;  %v1500_v17 = vmul.f32 %v2107_v5, %v2694_v44 }
 0x30a   : > { %1761 = vst [vmem:[%s2729_s22 + $0xb8] sm:$0xff] %v1605_v6  ;;  %v1508_v38 = vmul.f32 %v2712_v21, %v1500_v17 }
 0x30c   : > { %v1516_v18 = vadd.f32 %v2720_v63, %v1508_v38 }
 0x30e   : > { %1524 = vst [vmem:[%s2729_s22 + $0x90] sm:$0xff] %v1516_v18 }
 0x33b   : > { %v1345_v20 = vpop.permute.xlu1 %1344 }
 0x33c   : > { %v1378_v37 = vmul.f32 %v1345_v20, %v2585_v30 }
 0x33e   : > { %v1392_v41 = vmul.f32 %v2712_v21, %v1378_v37 }
 0x33f   : > { %v1340_v22 = vpop.permute.xlu1 %1339 }
 0x340   : > { %v1406_v28 = vadd.f32 %v2720_v63, %v1392_v41  ;;  %v1377_v34 = vmul.f32 %v1340_v22, %v2587_v32 }
 0x342   : > { %1747 = vst [vmem:[%s2729_s22 + $0x18] sm:$0xff] %v1406_v28  ;;  %v1391_v44 = vmul.f32 %v2712_v21, %v1377_v34 }
 0x343   : > { %v1355_v56 = vpop.permute.xlu1 %1354 }
 0x344   : > { %v1405_v57 = vadd.f32 %v2720_v63, %v1391_v44  ;;  %v1380_v19 = vmul.f32 %v1355_v56, %v2593_v40 }
 0x345   : > { %v1350_v42 = vpop.permute.xlu0 %1349 }
 0x346   : > { %1746 = vst [vmem:[%s2729_s22 + $0x10] sm:$0xff] %v1405_v57  ;;  %v1394_v30 = vmul.f32 %v2712_v21, %v1380_v19  ;;  %v1379_v0 = vmul.f32 %v1350_v42, %v2597_v47 }
 0x348   : > { %v1408_v60 = vadd.f32 %v2720_v63, %v1394_v30  ;;  %v1393_v2 = vmul.f32 %v2712_v21, %v1379_v0 }
 0x349   : > { %v1365_v32 = vpop.permute.xlu0 %1364 }
 0x34a   : > { %1749 = vst [vmem:[%s2729_s22 + $0x48] sm:$0xff] %v1408_v60  ;;  %v1407_v24 = vadd.f32 %v2720_v63, %v1393_v2  ;;  %v1382_v26 = vmul.f32 %v1365_v32, %v2603_v54  ;;  %v1360_v40 = vpop.permute.xlu1 %1359 }
 0x34b   : > { %v1381_v31 = vmul.f32 %v1360_v40, %v2599_v50 }
 0x34c   : > { %1748 = vst [vmem:[%s2729_s22 + $0x40] sm:$0xff] %v1407_v24  ;;  %v1396_v47 = vmul.f32 %v2712_v21, %v1382_v26 }
 0x34d   : > { %v1395_v1 = vmul.f32 %v2712_v21, %v1381_v31  ;;  %v1375_v36 = vpop.permute.xlu0 %1374 }
 0x34e   : > { %v1410_v39 = vadd.f32 %v2720_v63, %v1396_v47  ;;  %v1384_v16 = vmul.f32 %v1375_v36, %v2611_v7  ;;  %v1370_v43 = vpop.permute.xlu1 %1369 }
 0x34f   : > { %v1409_v54 = vadd.f32 %v2720_v63, %v1395_v1  ;;  %v1383_v45 = vmul.f32 %v1370_v43, %v2605_v55 }
 0x350   : > { %1751 = vst [vmem:[%s2729_s22 + $0x78] sm:$0xff] %v1410_v39  ;;  %v1398_v50 = vmul.f32 %v2712_v21, %v1384_v16 }
 0x351   : > { %1750 = vst [vmem:[%s2729_s22 + $0x70] sm:$0xff] %v1409_v54  ;;  %v1397_v46 = vmul.f32 %v2712_v21, %v1383_v45 }
 0x352   : > { %v1412_v9 = vadd.f32 %v2720_v63, %v1398_v50 }
 0x353   : > { %v1411_v7 = vadd.f32 %v2720_v63, %v1397_v46 }
 0x354   : > { %1753 = vst [vmem:[%s2729_s22 + $0xa8] sm:$0xff] %v1412_v9 }
 0x355   : > { %1752 = vst [vmem:[%s2729_s22 + $0xa0] sm:$0xff] %v1411_v7 }
 0x356   : > { %2121 = shalt.err (!%p2118_p4)
}
 0x357   : > { %s2122_s17 = scalar_lea.hbm %s2824_s28, 3072  ;;  %s2126_s21 = scalar_lea.hbm %s2877_s7, 12288 }
 0x358   : > { %p2123_p7 = scmp.ne.s32.totalorder %s2824_s28, %s2122_s17  ;;  %p2127_p10 = scmp.lt.s32.totalorder %s2824_s28, %s2877_s7 }
 0x359   : > { %p2128_p11 = scmp.lt.s32.totalorder %s2126_s21, %s2122_s17 }
 0x35a   : > { %p2124_p8 = pnand %p2123_p7, %p2253_p5 }
 0x35b   : > { %p2129_p12 = por %p2128_p11, %p2127_p10 }
 0x35c   : > { %p2125_p9 = pneg %p2124_p8 }
 0x35e   : > { %p2130_p13 = pnand %p2129_p12, %p2125_p9 }
 0x360   : > { %2133 = shalt.err (!%p2130_p13)
}
 0x361   : > { %s2173_s8 = smov 128   ;;  %s2174_s9 = smov 8  }
 0x362   : > { %2015 = dma.vmem_to_hbm [thread:$0]  (%p2253_p5), %s2818_s29, 3072, %s2824_s28, %s2830_s14, %s2173_s8, %s2173_s8, %s2174_s9  }
 0x363 PF: > { %p2021_p0 = scmp.ge.s32.totalorder %s2168_s27, 2  ;;  %s1645_s15 = sand.u32 1, %s2156_s24  }
 0x364   : > { %s1646_s16 = scalar_lea.sflag [#allocation3], %s1645_s15 }
 0x365   : > { %p2018_p1 = pnand %p2021_p0, %p2257_p6 }
 0x367   : > { %p2019_p2 = pneg %p2018_p1 }
 0x369   : > { %2151 = dma.done.wait (%p2019_p2), %s1646_s16, 3072  }
 0x36a   : > { %2153 = vsyncadd (%p2019_p2), %s1646_s16, 4294964224  ;;  %p17_p3 = scmp.ge.s32.totalorder %s2240_s30, 6   ;;  %s2880_s24 = smov %s2160_s25 }
 0x36b   : > { %s2881_s25 = smov %s2164_s26  ;;  %s2882_s26 = smov %s2251_s10 }
 0x36c   : > { %s2883_s27 = smov %s2240_s30  ;;  %19 = sbr.rel (!%p17_p3) target bundleno = 3 (0x3), region = 88 }
 0x371   :  { %1651 = vsyncpa [#allocation3], 1 }
 0x372   :  { %1653 = vsyncpa [#allocation3 + $0x1], 1 }

</bundles_post_ra>
